<compile_context>
chip_gen: v7x
topology: tpu7x:2x2x1
jax: 0.10.0
libtpu: 0.0.40
codegen_flags: <defaults>
</compile_context>

<pallas_src>
import functools

import jax
import jax.numpy as jnp
import numpy as np
from jax import lax
from jax.experimental import pallas as pl
from jax.experimental.pallas import tpu as pltpu

NEG_SLOPE = 0.01   # F.leaky_relu default
INPUT_DIM = 40     # 12 temporal + 8 frequency features, doubled by cumulative


def _leaky(x):
    return jnp.where(x >= 0, x, NEG_SLOPE * x)


# --------------------------------------------------------------------------
# Fused kernel: features + adjacency MLPs + GNNs + attention + final fc
# --------------------------------------------------------------------------
def fused_kernel(x_ref, aa_ref, cos_ref, sin_ref, tri_ref,
                 w1s_ref, b1s_ref, w2s_ref, b2s_ref,
                 w1t_ref, b1t_ref, w2t_ref, b2t_ref,
                 wgs_ref, bgs_ref, wgt_ref, bgt_ref,
                 wq_ref, bq_ref, wk_ref, bk_ref, wv_ref, bv_ref,
                 wfc_ref, bfc_ref, out_ref):
    BT, P, L = x_ref.shape
    BP = BT * P

    sig = x_ref[...].reshape(BP, L)      # flattened (batch_tile * patch, L)
    aa = aa_ref[...].reshape(BP, 2)      # precomputed arcsin / arctan stds

    idx = lax.broadcasted_iota(jnp.int32, (BP, L), 1)
    idx_f = idx.astype(jnp.float32)
    # torch.fft.fftfreq(L, d=1.0)
    freqs = jnp.where(idx < (L + 1) // 2, idx_f, idx_f - float(L)) * (1.0 / L)

    # ---------------- temporal features ----------------
    max_v = jnp.max(sig, -1, keepdims=True)
    min_v = jnp.min(sig, -1, keepdims=True)
    mean_v = jnp.mean(sig, -1, keepdims=True)
    ctr = sig - mean_v
    var_v = jnp.sum(ctr * ctr, -1, keepdims=True) * (1.0 / (L - 1))  # unbiased
    std_v = jnp.sqrt(var_v)
    inv_std = lax.rsqrt(var_v)                                        # EUP
    rms_v = jnp.sqrt(jnp.mean(sig * sig, -1, keepdims=True))
    ptp_v = max_v - min_v
    # entropy of softmax (numerically stable)
    z = sig - max_v
    ez = jnp.exp(z)
    se = jnp.sum(ez, -1, keepdims=True)
    sm = ez * pl.reciprocal(se, approx=True)
    logsm = z - jnp.log(se)
    ent_v = -jnp.sum(sm * logsm, -1, keepdims=True)
    asin_v = aa[:, 0:1]
    atan_v = aa[:, 1:2]
    kurt_v = jnp.mean(ctr ** 4, -1, keepdims=True) * (inv_std ** 4) - 3.0
    skew_v = jnp.mean(ctr ** 3, -1, keepdims=True) * (inv_std ** 3)

    # ---------------- frequency features (real DFT via MXU) ----------------
    re = jnp.dot(sig, cos_ref[...], preferred_element_type=jnp.float32)
    im = jnp.dot(sig, sin_ref[...], preferred_element_type=jnp.float32)  # sign irrelevant for |fft|^2
    amp2 = re * re + im * im                 # |fft|^2
    psd = amp2 * (1.0 / L)
    sum_psd = jnp.sum(psd, -1, keepdims=True)
    inv_sum_psd = pl.reciprocal(sum_psd, approx=True)
    mean_freq = jnp.sum(freqs * psd, -1, keepdims=True) * inv_sum_psd
    band_power = sum_psd
    occupied_bw = jnp.sum(psd * (freqs < 0.5).astype(jnp.float32),
                          -1, keepdims=True) * inv_sum_psd
    power_bw = jnp.sqrt(jnp.sum(psd * psd, -1, keepdims=True) * inv_sum_psd)
    max_psd = jnp.max(psd, -1, keepdims=True)
    max_amp2 = jnp.max(amp2, -1, keepdims=True)
    max_amp = jnp.sqrt(max_amp2)
    # freqs[argmax(|fft|)] (first occurrence)
    is_max = amp2 == max_amp2
    first_idx = jnp.min(jnp.where(is_max, idx_f, float(L)), -1, keepdims=True)
    freq_max_amp = jnp.sum(jnp.where(idx_f == first_idx, freqs, 0.0),
                           -1, keepdims=True)

    # freqs[argsort(psd)[:, L//2]]: stable ascending rank via L-1 lane rotations
    # (XLU slot, elementwise compares only) and ONE cross-lane reduction at the
    # end (replaces the previous per-j loop with 2 reductions per iteration).
    rank = jnp.zeros((BP, L), jnp.float32)
    for s in range(1, L):
        other = pltpu.roll(psd, shift=s, axis=1)   # other[r, j] = psd[r, (j-s) % L]
        tie_lt = idx >= s                          # (j - s) % L < j  <=>  j >= s
        before = (other < psd) | ((other == psd) & tie_lt)
        rank = rank + before.astype(jnp.float32)
    median_freq = jnp.sum(jnp.where(rank == float(L // 2), freqs, 0.0),
                          -1, keepdims=True)

    # ---------------- assemble 20 feature columns (lane concat) ----------------
    f20 = jnp.concatenate(
        [max_v, min_v, std_v, rms_v, mean_v, ptp_v, var_v, ent_v,
         asin_v, atan_v, kurt_v, skew_v,
         mean_freq, median_freq, band_power, occupied_bw, power_bw,
         max_psd, max_amp, freq_max_amp], axis=-1)            # (BP, 20)

    # ---------------- per batch element: cumsum, norm, GNNs, attention ------
    tri = tri_ref[...]
    w1s = w1s_ref[...]; b1s = b1s_ref[...]
    w2s = w2s_ref[...]; b2s = b2s_ref[...]
    w1t = w1t_ref[...]; b1t = b1t_ref[...]
    w2t = w2t_ref[...]; b2t = b2t_ref[...]
    wgs = wgs_ref[...]; bgs = bgs_ref[...]
    wgt = wgt_ref[...]; bgt = bgt_ref[...]
    wq = wq_ref[...]; bq = bq_ref[...]
    wk = wk_ref[...]; bk = bk_ref[...]
    wv = wv_ref[...]; bv = bv_ref[...]
    wfc = wfc_ref[...]; bfc = bfc_ref[...]

    F = 2 * f20.shape[-1]                                      # 40
    eyeF = (lax.broadcasted_iota(jnp.int32, (F, F), 0) ==
            lax.broadcasted_iota(jnp.int32, (F, F), 1)).astype(jnp.float32)

    def lin(a, w, b):
        return jnp.dot(a, w, preferred_element_type=jnp.float32) + b

    for b in range(BT):                                        # small static unroll
        f20_b = f20[b * P:(b + 1) * P, :]                      # (P, 20)
        # cumulative features: cumsum over patches via lower-triangular matmul
        cs = jnp.dot(tri, f20_b, preferred_element_type=jnp.float32)
        cum_b = cs * lax.rsqrt(jnp.maximum(jnp.abs(cs), 1e-12))
        raw = jnp.concatenate([f20_b, cum_b], axis=-1)         # (P, 40)
        X = raw * lax.rsqrt(jnp.sum(raw * raw))                # Frobenius-normalized
        # X.T via an MXU identity matmul (rhs-transposed dot_general); avoids
        # relying on an XLU 2-D transpose lowering for the narrow (P, 40) tile.
        Xt = lax.dot_general(eyeF, X, (((1,), (1,)), ((), ())),
                             preferred_element_type=jnp.float32)   # (40, P)

        # adjacency attention MLPs
        A_s = lin(jnp.tanh(lin(Xt, w1s, b1s)), w2s, b2s)       # (40, 40)
        A_t = lin(jnp.tanh(lin(X, w1t, b1t)), w2t, b2t)        # (P, P)

        # MPNN_mk (k=1): leaky_relu(theta(A @ X))
        H_s = _leaky(lin(jnp.dot(A_s, Xt, preferred_element_type=jnp.float32),
                         wgs, bgs))                            # (40, Hg)
        H_t = _leaky(lin(jnp.dot(A_t, X, preferred_element_type=jnp.float32),
                         wgt, bgt))                            # (P, Hg)
        H = jnp.concatenate([H_s, H_t], axis=0)                # (40 + P, Hg)

        # single-head self-attention
        Q = lin(H, wq, bq)
        K = lin(H, wk, bk)
        V = lin(H, wv, bv)
        scale = 1.0 / float(Q.shape[-1]) ** 0.5
        S = lax.dot_general(Q, K, (((1,), (1,)), ((), ())),
                            preferred_element_type=jnp.float32) * scale
        ew = jnp.exp(S - jnp.max(S, -1, keepdims=True))
        attw = ew * pl.reciprocal(jnp.sum(ew, -1, keepdims=True), approx=True)
        attn = jnp.dot(attw, V, preferred_element_type=jnp.float32)   # (N, Hg)

        # row-major flatten + final Linear(N * Hg, 1)
        out_ref[b] = jnp.sum(attn * wfc, keepdims=True) + bfc


# --------------------------------------------------------------------------
# Wrapper
# --------------------------------------------------------------------------
WEIGHT_ORDER = ["w1s", "b1s", "w2s", "b2s", "w1t", "b1t", "w2t", "b2t",
                "wgs", "bgs", "wgt", "bgt", "wq", "bq", "wk", "bk",
                "wv", "bv", "wfc2d", "bfc"]


def _pick_b_tile(bs):
    """Batch elements per grid step: amortize the ~600-cycle step overhead
    while keeping >= 2 grid steps so both v7x TensorCores get work."""
    if bs <= 2:
        return 1
    for cand in range(min(8, bs // 2), 0, -1):
        if bs % cand == 0:
            return cand
    return 1


@functools.partial(jax.jit, static_argnums=(2, 3))
def agcn_tf_forward(x, params, num_patch, patch_size):
    bs = x.shape[0]
    P, L = num_patch, patch_size
    xr = x.reshape(bs, P, L).astype(jnp.float32)

    # TODO(synk): arcsin/arctan have no guaranteed Mosaic transcendental
    # lowering; their per-patch unbiased stds are computed here (tiny XLA op)
    # and shipped as a (bs, P, 2) input instead of two extra (bs, P, L) streams.
    asin_std = jnp.std(jnp.arcsin(jnp.clip(xr, -1.0 + 1e-7, 1.0 - 1e-7)),
                       axis=-1, ddof=1)
    atan_std = jnp.std(jnp.arctan(xr), axis=-1, ddof=1)
    aa = jnp.stack([asin_std, atan_std], axis=-1).astype(jnp.float32)

    # host-side (batch independent) constants: DFT matrices + cumsum matrix
    t = np.arange(L, dtype=np.float64)
    ang = 2.0 * np.pi * np.outer(t, t) / L
    cosM = jnp.asarray(np.cos(ang), dtype=jnp.float32)
    sinM = jnp.asarray(np.sin(ang), dtype=jnp.float32)
    tri = jnp.asarray(np.tril(np.ones((P, P))), dtype=jnp.float32)

    b_tile = _pick_b_tile(bs)
    grid = (bs // b_tile,)

    w_args = [params[n] for n in WEIGHT_ORDER]
    in_specs = [
        pl.BlockSpec((b_tile, P, L), lambda b: (b, 0, 0)),
        pl.BlockSpec((b_tile, P, 2), lambda b: (b, 0, 0)),
        pl.BlockSpec((L, L), lambda b: (0, 0)),
        pl.BlockSpec((L, L), lambda b: (0, 0)),
        pl.BlockSpec((P, P), lambda b: (0, 0)),
    ] + [pl.BlockSpec(wa.shape, lambda b: (0, 0)) for wa in w_args]

    out = pl.pallas_call(
        fused_kernel,
        out_shape=jax.ShapeDtypeStruct((bs, 1, 1), jnp.float32),
        grid=grid,
        in_specs=in_specs,
        out_specs=pl.BlockSpec((b_tile, 1, 1), lambda b: (b, 0, 0)),
        compiler_params=pltpu.CompilerParams(
            dimension_semantics=("parallel",)),
    )(xr, aa, cosM, sinM, tri, *w_args)
    return out.reshape(bs, 1)


def init_params(key, num_patch, hidden_adj_dim, hidden_gnn_dim):
    P, Ha, Hg = num_patch, hidden_adj_dim, hidden_gnn_dim
    N = P + INPUT_DIM
    shapes = {
        "w1s": (P, Ha), "b1s": (1, Ha),
        "w2s": (Ha, INPUT_DIM), "b2s": (1, INPUT_DIM),
        "w1t": (INPUT_DIM, Ha), "b1t": (1, Ha),
        "w2t": (Ha, P), "b2t": (1, P),
        "wgs": (P, Hg), "bgs": (1, Hg),
        "wgt": (INPUT_DIM, Hg), "bgt": (1, Hg),
        "wq": (Hg, Hg), "bq": (1, Hg),
        "wk": (Hg, Hg), "bk": (1, Hg),
        "wv": (Hg, Hg), "bv": (1, Hg),
        "wfc2d": (N, Hg),   # fc weight reshaped row-major to match flatten of (N, Hg)
        "bfc": (1, 1),
    }
    keys = jax.random.split(key, len(shapes))
    params = {}
    for k, (name, shape) in zip(keys, shapes.items()):
        params[name] = (0.1 * jax.random.normal(k, shape)).astype(jnp.float32)
    return params


if __name__ == "__main__":
    num_patch, patch_size = 8, 16
    hidden_adj_dim, hidden_gnn_dim = 16, 32
    bs = 2

    key = jax.random.PRNGKey(0)
    kx, kp = jax.random.split(key)
    x = jax.random.normal(kx, (bs, num_patch * patch_size), dtype=jnp.float32)
    params = init_params(kp, num_patch, hidden_adj_dim, hidden_gnn_dim)

    out = agcn_tf_forward(x, params, num_patch, patch_size)
    out = jax.block_until_ready(out)
    assert out.shape == (bs, 1)
    assert bool(jnp.all(jnp.isfinite(out)))
    print("KERNEL_OK")
</pallas_src>

<mosaic_0001>
module attributes {stable_mosaic.version = 11 : i64} {
  func.func @fused_kernel(%arg0: i32, %arg1: memref<1x8x16xf32, #tpu.memory_space<vmem>>, %arg2: memref<1x8x2xf32, #tpu.memory_space<vmem>>, %arg3: memref<16x16xf32, #tpu.memory_space<vmem>>, %arg4: memref<16x16xf32, #tpu.memory_space<vmem>>, %arg5: memref<8x8xf32, #tpu.memory_space<vmem>>, %arg6: memref<8x16xf32, #tpu.memory_space<vmem>>, %arg7: memref<1x16xf32, #tpu.memory_space<vmem>>, %arg8: memref<16x40xf32, #tpu.memory_space<vmem>>, %arg9: memref<1x40xf32, #tpu.memory_space<vmem>>, %arg10: memref<40x16xf32, #tpu.memory_space<vmem>>, %arg11: memref<1x16xf32, #tpu.memory_space<vmem>>, %arg12: memref<16x8xf32, #tpu.memory_space<vmem>>, %arg13: memref<1x8xf32, #tpu.memory_space<vmem>>, %arg14: memref<8x32xf32, #tpu.memory_space<vmem>>, %arg15: memref<1x32xf32, #tpu.memory_space<vmem>>, %arg16: memref<40x32xf32, #tpu.memory_space<vmem>>, %arg17: memref<1x32xf32, #tpu.memory_space<vmem>>, %arg18: memref<32x32xf32, #tpu.memory_space<vmem>>, %arg19: memref<1x32xf32, #tpu.memory_space<vmem>>, %arg20: memref<32x32xf32, #tpu.memory_space<vmem>>, %arg21: memref<1x32xf32, #tpu.memory_space<vmem>>, %arg22: memref<32x32xf32, #tpu.memory_space<vmem>>, %arg23: memref<1x32xf32, #tpu.memory_space<vmem>>, %arg24: memref<48x32xf32, #tpu.memory_space<vmem>>, %arg25: memref<1x1xf32, #tpu.memory_space<vmem>>, %arg26: memref<1x1x1xf32, #tpu.memory_space<vmem>>) attributes {dimension_semantics = [#tpu.dimension_semantics<parallel>], iteration_bounds = array<i64: 2>, scalar_prefetch = 0 : i64, scratch_operands = 0 : i64, tpu.core_type = #tpu.core_type<tc>, window_params = [{transform_indices = @transform_0, window_bounds = array<i64: 1, 8, 16>}, {transform_indices = @transform_1, window_bounds = array<i64: 1, 8, 2>}, {pipeline_mode = #tpu.pipeline_mode<synchronous>, transform_indices = @transform_2, window_bounds = array<i64: 16, 16>}, {pipeline_mode = #tpu.pipeline_mode<synchronous>, transform_indices = @transform_3, window_bounds = array<i64: 16, 16>}, {pipeline_mode = #tpu.pipeline_mode<synchronous>, transform_indices = @transform_4, window_bounds = array<i64: 8, 8>}, {pipeline_mode = #tpu.pipeline_mode<synchronous>, transform_indices = @transform_5, window_bounds = array<i64: 8, 16>}, {pipeline_mode = #tpu.pipeline_mode<synchronous>, transform_indices = @transform_6, window_bounds = array<i64: 1, 16>}, {pipeline_mode = #tpu.pipeline_mode<synchronous>, transform_indices = @transform_7, window_bounds = array<i64: 16, 40>}, {pipeline_mode = #tpu.pipeline_mode<synchronous>, transform_indices = @transform_8, window_bounds = array<i64: 1, 40>}, {pipeline_mode = #tpu.pipeline_mode<synchronous>, transform_indices = @transform_9, window_bounds = array<i64: 40, 16>}, {pipeline_mode = #tpu.pipeline_mode<synchronous>, transform_indices = @transform_10, window_bounds = array<i64: 1, 16>}, {pipeline_mode = #tpu.pipeline_mode<synchronous>, transform_indices = @transform_11, window_bounds = array<i64: 16, 8>}, {pipeline_mode = #tpu.pipeline_mode<synchronous>, transform_indices = @transform_12, window_bounds = array<i64: 1, 8>}, {pipeline_mode = #tpu.pipeline_mode<synchronous>, transform_indices = @transform_13, window_bounds = array<i64: 8, 32>}, {pipeline_mode = #tpu.pipeline_mode<synchronous>, transform_indices = @transform_14, window_bounds = array<i64: 1, 32>}, {pipeline_mode = #tpu.pipeline_mode<synchronous>, transform_indices = @transform_15, window_bounds = array<i64: 40, 32>}, {pipeline_mode = #tpu.pipeline_mode<synchronous>, transform_indices = @transform_16, window_bounds = array<i64: 1, 32>}, {pipeline_mode = #tpu.pipeline_mode<synchronous>, transform_indices = @transform_17, window_bounds = array<i64: 32, 32>}, {pipeline_mode = #tpu.pipeline_mode<synchronous>, transform_indices = @transform_18, window_bounds = array<i64: 1, 32>}, {pipeline_mode = #tpu.pipeline_mode<synchronous>, transform_indices = @transform_19, window_bounds = array<i64: 32, 32>}, {pipeline_mode = #tpu.pipeline_mode<synchronous>, transform_indices = @transform_20, window_bounds = array<i64: 1, 32>}, {pipeline_mode = #tpu.pipeline_mode<synchronous>, transform_indices = @transform_21, window_bounds = array<i64: 32, 32>}, {pipeline_mode = #tpu.pipeline_mode<synchronous>, transform_indices = @transform_22, window_bounds = array<i64: 1, 32>}, {pipeline_mode = #tpu.pipeline_mode<synchronous>, transform_indices = @transform_23, window_bounds = array<i64: 48, 32>}, {pipeline_mode = #tpu.pipeline_mode<synchronous>, transform_indices = @transform_24, window_bounds = array<i64: 1, 1>}, {transform_indices = @transform_25, window_bounds = array<i64: 1, 1, 1>}]} {
    %c0 = arith.constant 0 : index
    %c0_0 = arith.constant 0 : index
    %c0_1 = arith.constant 0 : index
    %0 = vector.load %arg1[%c0, %c0_0, %c0_1] : memref<1x8x16xf32, #tpu.memory_space<vmem>>, vector<1x8x16xf32>
    %1 = vector.shape_cast %0 : vector<1x8x16xf32> to vector<8x16xf32>
    %c0_2 = arith.constant 0 : index
    %c0_3 = arith.constant 0 : index
    %c0_4 = arith.constant 0 : index
    %2 = vector.load %arg2[%c0_2, %c0_3, %c0_4] : memref<1x8x2xf32, #tpu.memory_space<vmem>>, vector<1x8x2xf32>
    %3 = vector.shape_cast %2 : vector<1x8x2xf32> to vector<8x2xf32>
    %4 = tpu.iota {dimensions = array<i32: 1>} : vector<8x16xi32>
    %5 = arith.sitofp %4 : vector<8x16xi32> to vector<8x16xf32>
    %c8_i32 = arith.constant 8 : i32
    %6 = vector.broadcast %c8_i32 : i32 to vector<8x16xi32>
    %7 = arith.cmpi slt, %4, %6 : vector<8x16xi32>
    %cst = arith.constant 1.600000e+01 : f32
    %8 = vector.broadcast %cst : f32 to vector<8x16xf32>
    %9 = arith.subf %5, %8 : vector<8x16xf32>
    %10 = arith.select %7, %5, %9 : vector<8x16xi1>, vector<8x16xf32>
    %cst_5 = arith.constant 6.250000e-02 : f32
    %11 = vector.broadcast %cst_5 : f32 to vector<8x16xf32>
    %12 = arith.mulf %10, %11 : vector<8x16xf32>
    %cst_6 = arith.constant dense<0xFF800000> : vector<8xf32>
    %13 = vector.multi_reduction <maximumf>, %1, %cst_6 [1] : vector<8x16xf32> to vector<8xf32>
    %14 = vector.shape_cast %13 : vector<8xf32> to vector<8x1xf32>
    %cst_7 = arith.constant dense<0x7F800000> : vector<8xf32>
    %15 = vector.multi_reduction <minimumf>, %1, %cst_7 [1] : vector<8x16xf32> to vector<8xf32>
    %16 = vector.shape_cast %15 : vector<8xf32> to vector<8x1xf32>
    %cst_8 = arith.constant dense<0.000000e+00> : vector<8xf32>
    %17 = vector.multi_reduction <add>, %1, %cst_8 [1] : vector<8x16xf32> to vector<8xf32>
    %18 = vector.shape_cast %17 : vector<8xf32> to vector<8x1xf32>
    %cst_9 = arith.constant 1.600000e+01 : f32
    %19 = vector.broadcast %cst_9 : f32 to vector<8x1xf32>
    %20 = arith.divf %18, %19 : vector<8x1xf32>
    %21 = vector.broadcast %20 : vector<8x1xf32> to vector<8x16xf32>
    %22 = arith.subf %1, %21 : vector<8x16xf32>
    %23 = arith.mulf %22, %22 : vector<8x16xf32>
    %cst_10 = arith.constant dense<0.000000e+00> : vector<8xf32>
    %24 = vector.multi_reduction <add>, %23, %cst_10 [1] : vector<8x16xf32> to vector<8xf32>
    %25 = vector.shape_cast %24 : vector<8xf32> to vector<8x1xf32>
    %cst_11 = arith.constant 0.0666666701 : f32
    %26 = vector.broadcast %cst_11 : f32 to vector<8x1xf32>
    %27 = arith.mulf %25, %26 : vector<8x1xf32>
    %28 = math.sqrt %27 : vector<8x1xf32>
    %29 = math.rsqrt %27 : vector<8x1xf32>
    %30 = arith.mulf %1, %1 : vector<8x16xf32>
    %cst_12 = arith.constant dense<0.000000e+00> : vector<8xf32>
    %31 = vector.multi_reduction <add>, %30, %cst_12 [1] : vector<8x16xf32> to vector<8xf32>
    %32 = vector.shape_cast %31 : vector<8xf32> to vector<8x1xf32>
    %cst_13 = arith.constant 1.600000e+01 : f32
    %33 = vector.broadcast %cst_13 : f32 to vector<8x1xf32>
    %34 = arith.divf %32, %33 : vector<8x1xf32>
    %35 = math.sqrt %34 : vector<8x1xf32>
    %36 = arith.subf %14, %16 : vector<8x1xf32>
    %37 = vector.broadcast %14 : vector<8x1xf32> to vector<8x16xf32>
    %38 = arith.subf %1, %37 : vector<8x16xf32>
    %39 = math.exp %38 : vector<8x16xf32>
    %cst_14 = arith.constant dense<0.000000e+00> : vector<8xf32>
    %40 = vector.multi_reduction <add>, %39, %cst_14 [1] : vector<8x16xf32> to vector<8xf32>
    %41 = vector.shape_cast %40 : vector<8xf32> to vector<8x1xf32>
    %42 = tpu.reciprocal %41 {approx = true} : vector<8x1xf32> -> vector<8x1xf32>
    %43 = vector.broadcast %42 : vector<8x1xf32> to vector<8x16xf32>
    %44 = arith.mulf %39, %43 : vector<8x16xf32>
    %45 = math.log %41 : vector<8x1xf32>
    %46 = vector.broadcast %45 : vector<8x1xf32> to vector<8x16xf32>
    %47 = arith.subf %38, %46 : vector<8x16xf32>
    %48 = arith.mulf %44, %47 : vector<8x16xf32>
    %cst_15 = arith.constant dense<0.000000e+00> : vector<8xf32>
    %49 = vector.multi_reduction <add>, %48, %cst_15 [1] : vector<8x16xf32> to vector<8xf32>
    %50 = vector.shape_cast %49 : vector<8xf32> to vector<8x1xf32>
    %cst_16 = arith.constant 0.000000e+00 : f32
    %51 = vector.broadcast %cst_16 : f32 to vector<8x1xf32>
    %52 = arith.subf %51, %50 : vector<8x1xf32>
    %53 = vector.extract_strided_slice %3 {offsets = [0, 0], sizes = [8, 1], strides = [1, 1]} : vector<8x2xf32> to vector<8x1xf32>
    %54 = vector.extract_strided_slice %3 {offsets = [0, 1], sizes = [8, 1], strides = [1, 1]} : vector<8x2xf32> to vector<8x1xf32>
    %55 = arith.mulf %22, %22 : vector<8x16xf32>
    %56 = arith.mulf %55, %55 : vector<8x16xf32>
    %cst_17 = arith.constant dense<0.000000e+00> : vector<8xf32>
    %57 = vector.multi_reduction <add>, %56, %cst_17 [1] : vector<8x16xf32> to vector<8xf32>
    %58 = vector.shape_cast %57 : vector<8xf32> to vector<8x1xf32>
    %cst_18 = arith.constant 1.600000e+01 : f32
    %59 = vector.broadcast %cst_18 : f32 to vector<8x1xf32>
    %60 = arith.divf %58, %59 : vector<8x1xf32>
    %61 = arith.mulf %29, %29 : vector<8x1xf32>
    %62 = arith.mulf %61, %61 : vector<8x1xf32>
    %63 = arith.mulf %60, %62 : vector<8x1xf32>
    %cst_19 = arith.constant 3.000000e+00 : f32
    %64 = vector.broadcast %cst_19 : f32 to vector<8x1xf32>
    %65 = arith.subf %63, %64 : vector<8x1xf32>
    %66 = arith.mulf %22, %22 : vector<8x16xf32>
    %67 = arith.mulf %22, %66 : vector<8x16xf32>
    %cst_20 = arith.constant dense<0.000000e+00> : vector<8xf32>
    %68 = vector.multi_reduction <add>, %67, %cst_20 [1] : vector<8x16xf32> to vector<8xf32>
    %69 = vector.shape_cast %68 : vector<8xf32> to vector<8x1xf32>
    %cst_21 = arith.constant 1.600000e+01 : f32
    %70 = vector.broadcast %cst_21 : f32 to vector<8x1xf32>
    %71 = arith.divf %69, %70 : vector<8x1xf32>
    %72 = arith.mulf %29, %29 : vector<8x1xf32>
    %73 = arith.mulf %29, %72 : vector<8x1xf32>
    %74 = arith.mulf %71, %73 : vector<8x1xf32>
    %c0_22 = arith.constant 0 : index
    %c0_23 = arith.constant 0 : index
    %75 = vector.load %arg3[%c0_22, %c0_23] : memref<16x16xf32, #tpu.memory_space<vmem>>, vector<16x16xf32>
    %cst_24 = arith.constant dense<0.000000e+00> : vector<8x16xf32>
    %76 = tpu.matmul %1, %75, %cst_24 {dimension_numbers = #tpu.dot_dimension_numbers<[1], [0], [0], [1], [0, 0, 1, 1], [], []>} : vector<8x16xf32>, vector<16x16xf32>, vector<8x16xf32> -> vector<8x16xf32>
    %c0_25 = arith.constant 0 : index
    %c0_26 = arith.constant 0 : index
    %77 = vector.load %arg4[%c0_25, %c0_26] : memref<16x16xf32, #tpu.memory_space<vmem>>, vector<16x16xf32>
    %cst_27 = arith.constant dense<0.000000e+00> : vector<8x16xf32>
    %78 = tpu.matmul %1, %77, %cst_27 {dimension_numbers = #tpu.dot_dimension_numbers<[1], [0], [0], [1], [0, 0, 1, 1], [], []>} : vector<8x16xf32>, vector<16x16xf32>, vector<8x16xf32> -> vector<8x16xf32>
    %79 = arith.mulf %76, %76 : vector<8x16xf32>
    %80 = arith.mulf %78, %78 : vector<8x16xf32>
    %81 = arith.addf %79, %80 : vector<8x16xf32>
    %cst_28 = arith.constant 6.250000e-02 : f32
    %82 = vector.broadcast %cst_28 : f32 to vector<8x16xf32>
    %83 = arith.mulf %81, %82 : vector<8x16xf32>
    %cst_29 = arith.constant dense<0.000000e+00> : vector<8xf32>
    %84 = vector.multi_reduction <add>, %83, %cst_29 [1] : vector<8x16xf32> to vector<8xf32>
    %85 = vector.shape_cast %84 : vector<8xf32> to vector<8x1xf32>
    %86 = tpu.reciprocal %85 {approx = true} : vector<8x1xf32> -> vector<8x1xf32>
    %87 = arith.mulf %12, %83 : vector<8x16xf32>
    %cst_30 = arith.constant dense<0.000000e+00> : vector<8xf32>
    %88 = vector.multi_reduction <add>, %87, %cst_30 [1] : vector<8x16xf32> to vector<8xf32>
    %89 = vector.shape_cast %88 : vector<8xf32> to vector<8x1xf32>
    %90 = arith.mulf %89, %86 : vector<8x1xf32>
    %cst_31 = arith.constant 5.000000e-01 : f32
    %91 = vector.broadcast %cst_31 : f32 to vector<8x16xf32>
    %92 = arith.cmpf olt, %12, %91 : vector<8x16xf32>
    %93 = arith.extui %92 : vector<8x16xi1> to vector<8x16xi32>
    %94 = arith.sitofp %93 : vector<8x16xi32> to vector<8x16xf32>
    %95 = arith.mulf %83, %94 : vector<8x16xf32>
    %cst_32 = arith.constant dense<0.000000e+00> : vector<8xf32>
    %96 = vector.multi_reduction <add>, %95, %cst_32 [1] : vector<8x16xf32> to vector<8xf32>
    %97 = vector.shape_cast %96 : vector<8xf32> to vector<8x1xf32>
    %98 = arith.mulf %97, %86 : vector<8x1xf32>
    %99 = arith.mulf %83, %83 : vector<8x16xf32>
    %cst_33 = arith.constant dense<0.000000e+00> : vector<8xf32>
    %100 = vector.multi_reduction <add>, %99, %cst_33 [1] : vector<8x16xf32> to vector<8xf32>
    %101 = vector.shape_cast %100 : vector<8xf32> to vector<8x1xf32>
    %102 = arith.mulf %101, %86 : vector<8x1xf32>
    %103 = math.sqrt %102 : vector<8x1xf32>
    %cst_34 = arith.constant dense<0xFF800000> : vector<8xf32>
    %104 = vector.multi_reduction <maximumf>, %83, %cst_34 [1] : vector<8x16xf32> to vector<8xf32>
    %105 = vector.shape_cast %104 : vector<8xf32> to vector<8x1xf32>
    %cst_35 = arith.constant dense<0xFF800000> : vector<8xf32>
    %106 = vector.multi_reduction <maximumf>, %81, %cst_35 [1] : vector<8x16xf32> to vector<8xf32>
    %107 = vector.shape_cast %106 : vector<8xf32> to vector<8x1xf32>
    %108 = math.sqrt %107 : vector<8x1xf32>
    %109 = vector.broadcast %107 : vector<8x1xf32> to vector<8x16xf32>
    %110 = arith.cmpf oeq, %81, %109 : vector<8x16xf32>
    %cst_36 = arith.constant 1.600000e+01 : f32
    %111 = vector.broadcast %cst_36 : f32 to vector<8x16xf32>
    %112 = arith.select %110, %5, %111 : vector<8x16xi1>, vector<8x16xf32>
    %cst_37 = arith.constant dense<0x7F800000> : vector<8xf32>
    %113 = vector.multi_reduction <minimumf>, %112, %cst_37 [1] : vector<8x16xf32> to vector<8xf32>
    %114 = vector.shape_cast %113 : vector<8xf32> to vector<8x1xf32>
    %115 = vector.broadcast %114 : vector<8x1xf32> to vector<8x16xf32>
    %116 = arith.cmpf oeq, %5, %115 : vector<8x16xf32>
    %cst_38 = arith.constant 0.000000e+00 : f32
    %117 = vector.broadcast %cst_38 : f32 to vector<8x16xf32>
    %118 = arith.select %116, %12, %117 : vector<8x16xi1>, vector<8x16xf32>
    %cst_39 = arith.constant dense<0.000000e+00> : vector<8xf32>
    %119 = vector.multi_reduction <add>, %118, %cst_39 [1] : vector<8x16xf32> to vector<8xf32>
    %120 = vector.shape_cast %119 : vector<8xf32> to vector<8x1xf32>
    %cst_40 = arith.constant 0.000000e+00 : f32
    %121 = vector.broadcast %cst_40 : f32 to vector<8x16xf32>
    %c1_i32 = arith.constant 1 : i32
    %122 = tpu.dynamic_rotate %83 by %c1_i32 dim 1 : vector<8x16xf32>, i32 -> vector<8x16xf32>
    %c1_i32_41 = arith.constant 1 : i32
    %123 = vector.broadcast %c1_i32_41 : i32 to vector<8x16xi32>
    %124 = arith.cmpi sge, %4, %123 : vector<8x16xi32>
    %125 = arith.cmpf olt, %122, %83 : vector<8x16xf32>
    %126 = arith.cmpf oeq, %122, %83 : vector<8x16xf32>
    %127 = arith.andi %126, %124 : vector<8x16xi1>
    %128 = arith.ori %125, %127 : vector<8x16xi1>
    %129 = arith.extui %128 : vector<8x16xi1> to vector<8x16xi32>
    %130 = arith.sitofp %129 : vector<8x16xi32> to vector<8x16xf32>
    %131 = arith.addf %121, %130 : vector<8x16xf32>
    %c2_i32 = arith.constant 2 : i32
    %132 = tpu.dynamic_rotate %83 by %c2_i32 dim 1 : vector<8x16xf32>, i32 -> vector<8x16xf32>
    %c2_i32_42 = arith.constant 2 : i32
    %133 = vector.broadcast %c2_i32_42 : i32 to vector<8x16xi32>
    %134 = arith.cmpi sge, %4, %133 : vector<8x16xi32>
    %135 = arith.cmpf olt, %132, %83 : vector<8x16xf32>
    %136 = arith.cmpf oeq, %132, %83 : vector<8x16xf32>
    %137 = arith.andi %136, %134 : vector<8x16xi1>
    %138 = arith.ori %135, %137 : vector<8x16xi1>
    %139 = arith.extui %138 : vector<8x16xi1> to vector<8x16xi32>
    %140 = arith.sitofp %139 : vector<8x16xi32> to vector<8x16xf32>
    %141 = arith.addf %131, %140 : vector<8x16xf32>
    %c3_i32 = arith.constant 3 : i32
    %142 = tpu.dynamic_rotate %83 by %c3_i32 dim 1 : vector<8x16xf32>, i32 -> vector<8x16xf32>
    %c3_i32_43 = arith.constant 3 : i32
    %143 = vector.broadcast %c3_i32_43 : i32 to vector<8x16xi32>
    %144 = arith.cmpi sge, %4, %143 : vector<8x16xi32>
    %145 = arith.cmpf olt, %142, %83 : vector<8x16xf32>
    %146 = arith.cmpf oeq, %142, %83 : vector<8x16xf32>
    %147 = arith.andi %146, %144 : vector<8x16xi1>
    %148 = arith.ori %145, %147 : vector<8x16xi1>
    %149 = arith.extui %148 : vector<8x16xi1> to vector<8x16xi32>
    %150 = arith.sitofp %149 : vector<8x16xi32> to vector<8x16xf32>
    %151 = arith.addf %141, %150 : vector<8x16xf32>
    %c4_i32 = arith.constant 4 : i32
    %152 = tpu.dynamic_rotate %83 by %c4_i32 dim 1 : vector<8x16xf32>, i32 -> vector<8x16xf32>
    %c4_i32_44 = arith.constant 4 : i32
    %153 = vector.broadcast %c4_i32_44 : i32 to vector<8x16xi32>
    %154 = arith.cmpi sge, %4, %153 : vector<8x16xi32>
    %155 = arith.cmpf olt, %152, %83 : vector<8x16xf32>
    %156 = arith.cmpf oeq, %152, %83 : vector<8x16xf32>
    %157 = arith.andi %156, %154 : vector<8x16xi1>
    %158 = arith.ori %155, %157 : vector<8x16xi1>
    %159 = arith.extui %158 : vector<8x16xi1> to vector<8x16xi32>
    %160 = arith.sitofp %159 : vector<8x16xi32> to vector<8x16xf32>
    %161 = arith.addf %151, %160 : vector<8x16xf32>
    %c5_i32 = arith.constant 5 : i32
    %162 = tpu.dynamic_rotate %83 by %c5_i32 dim 1 : vector<8x16xf32>, i32 -> vector<8x16xf32>
    %c5_i32_45 = arith.constant 5 : i32
    %163 = vector.broadcast %c5_i32_45 : i32 to vector<8x16xi32>
    %164 = arith.cmpi sge, %4, %163 : vector<8x16xi32>
    %165 = arith.cmpf olt, %162, %83 : vector<8x16xf32>
    %166 = arith.cmpf oeq, %162, %83 : vector<8x16xf32>
    %167 = arith.andi %166, %164 : vector<8x16xi1>
    %168 = arith.ori %165, %167 : vector<8x16xi1>
    %169 = arith.extui %168 : vector<8x16xi1> to vector<8x16xi32>
    %170 = arith.sitofp %169 : vector<8x16xi32> to vector<8x16xf32>
    %171 = arith.addf %161, %170 : vector<8x16xf32>
    %c6_i32 = arith.constant 6 : i32
    %172 = tpu.dynamic_rotate %83 by %c6_i32 dim 1 : vector<8x16xf32>, i32 -> vector<8x16xf32>
    %c6_i32_46 = arith.constant 6 : i32
    %173 = vector.broadcast %c6_i32_46 : i32 to vector<8x16xi32>
    %174 = arith.cmpi sge, %4, %173 : vector<8x16xi32>
    %175 = arith.cmpf olt, %172, %83 : vector<8x16xf32>
    %176 = arith.cmpf oeq, %172, %83 : vector<8x16xf32>
    %177 = arith.andi %176, %174 : vector<8x16xi1>
    %178 = arith.ori %175, %177 : vector<8x16xi1>
    %179 = arith.extui %178 : vector<8x16xi1> to vector<8x16xi32>
    %180 = arith.sitofp %179 : vector<8x16xi32> to vector<8x16xf32>
    %181 = arith.addf %171, %180 : vector<8x16xf32>
    %c7_i32 = arith.constant 7 : i32
    %182 = tpu.dynamic_rotate %83 by %c7_i32 dim 1 : vector<8x16xf32>, i32 -> vector<8x16xf32>
    %c7_i32_47 = arith.constant 7 : i32
    %183 = vector.broadcast %c7_i32_47 : i32 to vector<8x16xi32>
    %184 = arith.cmpi sge, %4, %183 : vector<8x16xi32>
    %185 = arith.cmpf olt, %182, %83 : vector<8x16xf32>
    %186 = arith.cmpf oeq, %182, %83 : vector<8x16xf32>
    %187 = arith.andi %186, %184 : vector<8x16xi1>
    %188 = arith.ori %185, %187 : vector<8x16xi1>
    %189 = arith.extui %188 : vector<8x16xi1> to vector<8x16xi32>
    %190 = arith.sitofp %189 : vector<8x16xi32> to vector<8x16xf32>
    %191 = arith.addf %181, %190 : vector<8x16xf32>
    %c8_i32_48 = arith.constant 8 : i32
    %192 = tpu.dynamic_rotate %83 by %c8_i32_48 dim 1 : vector<8x16xf32>, i32 -> vector<8x16xf32>
    %c8_i32_49 = arith.constant 8 : i32
    %193 = vector.broadcast %c8_i32_49 : i32 to vector<8x16xi32>
    %194 = arith.cmpi sge, %4, %193 : vector<8x16xi32>
    %195 = arith.cmpf olt, %192, %83 : vector<8x16xf32>
    %196 = arith.cmpf oeq, %192, %83 : vector<8x16xf32>
    %197 = arith.andi %196, %194 : vector<8x16xi1>
    %198 = arith.ori %195, %197 : vector<8x16xi1>
    %199 = arith.extui %198 : vector<8x16xi1> to vector<8x16xi32>
    %200 = arith.sitofp %199 : vector<8x16xi32> to vector<8x16xf32>
    %201 = arith.addf %191, %200 : vector<8x16xf32>
    %c9_i32 = arith.constant 9 : i32
    %202 = tpu.dynamic_rotate %83 by %c9_i32 dim 1 : vector<8x16xf32>, i32 -> vector<8x16xf32>
    %c9_i32_50 = arith.constant 9 : i32
    %203 = vector.broadcast %c9_i32_50 : i32 to vector<8x16xi32>
    %204 = arith.cmpi sge, %4, %203 : vector<8x16xi32>
    %205 = arith.cmpf olt, %202, %83 : vector<8x16xf32>
    %206 = arith.cmpf oeq, %202, %83 : vector<8x16xf32>
    %207 = arith.andi %206, %204 : vector<8x16xi1>
    %208 = arith.ori %205, %207 : vector<8x16xi1>
    %209 = arith.extui %208 : vector<8x16xi1> to vector<8x16xi32>
    %210 = arith.sitofp %209 : vector<8x16xi32> to vector<8x16xf32>
    %211 = arith.addf %201, %210 : vector<8x16xf32>
    %c10_i32 = arith.constant 10 : i32
    %212 = tpu.dynamic_rotate %83 by %c10_i32 dim 1 : vector<8x16xf32>, i32 -> vector<8x16xf32>
    %c10_i32_51 = arith.constant 10 : i32
    %213 = vector.broadcast %c10_i32_51 : i32 to vector<8x16xi32>
    %214 = arith.cmpi sge, %4, %213 : vector<8x16xi32>
    %215 = arith.cmpf olt, %212, %83 : vector<8x16xf32>
    %216 = arith.cmpf oeq, %212, %83 : vector<8x16xf32>
    %217 = arith.andi %216, %214 : vector<8x16xi1>
    %218 = arith.ori %215, %217 : vector<8x16xi1>
    %219 = arith.extui %218 : vector<8x16xi1> to vector<8x16xi32>
    %220 = arith.sitofp %219 : vector<8x16xi32> to vector<8x16xf32>
    %221 = arith.addf %211, %220 : vector<8x16xf32>
    %c11_i32 = arith.constant 11 : i32
    %222 = tpu.dynamic_rotate %83 by %c11_i32 dim 1 : vector<8x16xf32>, i32 -> vector<8x16xf32>
    %c11_i32_52 = arith.constant 11 : i32
    %223 = vector.broadcast %c11_i32_52 : i32 to vector<8x16xi32>
    %224 = arith.cmpi sge, %4, %223 : vector<8x16xi32>
    %225 = arith.cmpf olt, %222, %83 : vector<8x16xf32>
    %226 = arith.cmpf oeq, %222, %83 : vector<8x16xf32>
    %227 = arith.andi %226, %224 : vector<8x16xi1>
    %228 = arith.ori %225, %227 : vector<8x16xi1>
    %229 = arith.extui %228 : vector<8x16xi1> to vector<8x16xi32>
    %230 = arith.sitofp %229 : vector<8x16xi32> to vector<8x16xf32>
    %231 = arith.addf %221, %230 : vector<8x16xf32>
    %c12_i32 = arith.constant 12 : i32
    %232 = tpu.dynamic_rotate %83 by %c12_i32 dim 1 : vector<8x16xf32>, i32 -> vector<8x16xf32>
    %c12_i32_53 = arith.constant 12 : i32
    %233 = vector.broadcast %c12_i32_53 : i32 to vector<8x16xi32>
    %234 = arith.cmpi sge, %4, %233 : vector<8x16xi32>
    %235 = arith.cmpf olt, %232, %83 : vector<8x16xf32>
    %236 = arith.cmpf oeq, %232, %83 : vector<8x16xf32>
    %237 = arith.andi %236, %234 : vector<8x16xi1>
    %238 = arith.ori %235, %237 : vector<8x16xi1>
    %239 = arith.extui %238 : vector<8x16xi1> to vector<8x16xi32>
    %240 = arith.sitofp %239 : vector<8x16xi32> to vector<8x16xf32>
    %241 = arith.addf %231, %240 : vector<8x16xf32>
    %c13_i32 = arith.constant 13 : i32
    %242 = tpu.dynamic_rotate %83 by %c13_i32 dim 1 : vector<8x16xf32>, i32 -> vector<8x16xf32>
    %c13_i32_54 = arith.constant 13 : i32
    %243 = vector.broadcast %c13_i32_54 : i32 to vector<8x16xi32>
    %244 = arith.cmpi sge, %4, %243 : vector<8x16xi32>
    %245 = arith.cmpf olt, %242, %83 : vector<8x16xf32>
    %246 = arith.cmpf oeq, %242, %83 : vector<8x16xf32>
    %247 = arith.andi %246, %244 : vector<8x16xi1>
    %248 = arith.ori %245, %247 : vector<8x16xi1>
    %249 = arith.extui %248 : vector<8x16xi1> to vector<8x16xi32>
    %250 = arith.sitofp %249 : vector<8x16xi32> to vector<8x16xf32>
    %251 = arith.addf %241, %250 : vector<8x16xf32>
    %c14_i32 = arith.constant 14 : i32
    %252 = tpu.dynamic_rotate %83 by %c14_i32 dim 1 : vector<8x16xf32>, i32 -> vector<8x16xf32>
    %c14_i32_55 = arith.constant 14 : i32
    %253 = vector.broadcast %c14_i32_55 : i32 to vector<8x16xi32>
    %254 = arith.cmpi sge, %4, %253 : vector<8x16xi32>
    %255 = arith.cmpf olt, %252, %83 : vector<8x16xf32>
    %256 = arith.cmpf oeq, %252, %83 : vector<8x16xf32>
    %257 = arith.andi %256, %254 : vector<8x16xi1>
    %258 = arith.ori %255, %257 : vector<8x16xi1>
    %259 = arith.extui %258 : vector<8x16xi1> to vector<8x16xi32>
    %260 = arith.sitofp %259 : vector<8x16xi32> to vector<8x16xf32>
    %261 = arith.addf %251, %260 : vector<8x16xf32>
    %c15_i32 = arith.constant 15 : i32
    %262 = tpu.dynamic_rotate %83 by %c15_i32 dim 1 : vector<8x16xf32>, i32 -> vector<8x16xf32>
    %c15_i32_56 = arith.constant 15 : i32
    %263 = vector.broadcast %c15_i32_56 : i32 to vector<8x16xi32>
    %264 = arith.cmpi sge, %4, %263 : vector<8x16xi32>
    %265 = arith.cmpf olt, %262, %83 : vector<8x16xf32>
    %266 = arith.cmpf oeq, %262, %83 : vector<8x16xf32>
    %267 = arith.andi %266, %264 : vector<8x16xi1>
    %268 = arith.ori %265, %267 : vector<8x16xi1>
    %269 = arith.extui %268 : vector<8x16xi1> to vector<8x16xi32>
    %270 = arith.sitofp %269 : vector<8x16xi32> to vector<8x16xf32>
    %271 = arith.addf %261, %270 : vector<8x16xf32>
    %cst_57 = arith.constant 8.000000e+00 : f32
    %272 = vector.broadcast %cst_57 : f32 to vector<8x16xf32>
    %273 = arith.cmpf oeq, %271, %272 : vector<8x16xf32>
    %cst_58 = arith.constant 0.000000e+00 : f32
    %274 = vector.broadcast %cst_58 : f32 to vector<8x16xf32>
    %275 = arith.select %273, %12, %274 : vector<8x16xi1>, vector<8x16xf32>
    %cst_59 = arith.constant dense<0.000000e+00> : vector<8xf32>
    %276 = vector.multi_reduction <add>, %275, %cst_59 [1] : vector<8x16xf32> to vector<8xf32>
    %277 = vector.shape_cast %276 : vector<8xf32> to vector<8x1xf32>
    %278 = tpu.concatenate %14, %16, %28, %35, %20, %36, %27, %52, %53, %54, %65, %74, %90, %277, %85, %98 in 1 : vector<8x1xf32>, vector<8x1xf32>, vector<8x1xf32>, vector<8x1xf32>, vector<8x1xf32>, vector<8x1xf32>, vector<8x1xf32>, vector<8x1xf32>, vector<8x1xf32>, vector<8x1xf32>, vector<8x1xf32>, vector<8x1xf32>, vector<8x1xf32>, vector<8x1xf32>, vector<8x1xf32>, vector<8x1xf32> -> vector<8x16xf32>
    %279 = tpu.concatenate %103, %105, %108, %120 in 1 : vector<8x1xf32>, vector<8x1xf32>, vector<8x1xf32>, vector<8x1xf32> -> vector<8x4xf32>
    %280 = tpu.concatenate %278, %279 in 1 : vector<8x16xf32>, vector<8x4xf32> -> vector<8x20xf32>
    %c0_60 = arith.constant 0 : index
    %c0_61 = arith.constant 0 : index
    %281 = vector.load %arg5[%c0_60, %c0_61] : memref<8x8xf32, #tpu.memory_space<vmem>>, vector<8x8xf32>
    %c0_62 = arith.constant 0 : index
    %c0_63 = arith.constant 0 : index
    %282 = vector.load %arg6[%c0_62, %c0_63] : memref<8x16xf32, #tpu.memory_space<vmem>>, vector<8x16xf32>
    %c0_64 = arith.constant 0 : index
    %c0_65 = arith.constant 0 : index
    %283 = vector.load %arg7[%c0_64, %c0_65] : memref<1x16xf32, #tpu.memory_space<vmem>>, vector<1x16xf32>
    %c0_66 = arith.constant 0 : index
    %c0_67 = arith.constant 0 : index
    %284 = vector.load %arg8[%c0_66, %c0_67] : memref<16x40xf32, #tpu.memory_space<vmem>>, vector<16x40xf32>
    %c0_68 = arith.constant 0 : index
    %c0_69 = arith.constant 0 : index
    %285 = vector.load %arg9[%c0_68, %c0_69] : memref<1x40xf32, #tpu.memory_space<vmem>>, vector<1x40xf32>
    %c0_70 = arith.constant 0 : index
    %c0_71 = arith.constant 0 : index
    %286 = vector.load %arg10[%c0_70, %c0_71] : memref<40x16xf32, #tpu.memory_space<vmem>>, vector<40x16xf32>
    %c0_72 = arith.constant 0 : index
    %c0_73 = arith.constant 0 : index
    %287 = vector.load %arg11[%c0_72, %c0_73] : memref<1x16xf32, #tpu.memory_space<vmem>>, vector<1x16xf32>
    %c0_74 = arith.constant 0 : index
    %c0_75 = arith.constant 0 : index
    %288 = vector.load %arg12[%c0_74, %c0_75] : memref<16x8xf32, #tpu.memory_space<vmem>>, vector<16x8xf32>
    %c0_76 = arith.constant 0 : index
    %c0_77 = arith.constant 0 : index
    %289 = vector.load %arg13[%c0_76, %c0_77] : memref<1x8xf32, #tpu.memory_space<vmem>>, vector<1x8xf32>
    %c0_78 = arith.constant 0 : index
    %c0_79 = arith.constant 0 : index
    %290 = vector.load %arg14[%c0_78, %c0_79] : memref<8x32xf32, #tpu.memory_space<vmem>>, vector<8x32xf32>
    %c0_80 = arith.constant 0 : index
    %c0_81 = arith.constant 0 : index
    %291 = vector.load %arg15[%c0_80, %c0_81] : memref<1x32xf32, #tpu.memory_space<vmem>>, vector<1x32xf32>
    %c0_82 = arith.constant 0 : index
    %c0_83 = arith.constant 0 : index
    %292 = vector.load %arg16[%c0_82, %c0_83] : memref<40x32xf32, #tpu.memory_space<vmem>>, vector<40x32xf32>
    %c0_84 = arith.constant 0 : index
    %c0_85 = arith.constant 0 : index
    %293 = vector.load %arg17[%c0_84, %c0_85] : memref<1x32xf32, #tpu.memory_space<vmem>>, vector<1x32xf32>
    %c0_86 = arith.constant 0 : index
    %c0_87 = arith.constant 0 : index
    %294 = vector.load %arg18[%c0_86, %c0_87] : memref<32x32xf32, #tpu.memory_space<vmem>>, vector<32x32xf32>
    %c0_88 = arith.constant 0 : index
    %c0_89 = arith.constant 0 : index
    %295 = vector.load %arg19[%c0_88, %c0_89] : memref<1x32xf32, #tpu.memory_space<vmem>>, vector<1x32xf32>
    %c0_90 = arith.constant 0 : index
    %c0_91 = arith.constant 0 : index
    %296 = vector.load %arg20[%c0_90, %c0_91] : memref<32x32xf32, #tpu.memory_space<vmem>>, vector<32x32xf32>
    %c0_92 = arith.constant 0 : index
    %c0_93 = arith.constant 0 : index
    %297 = vector.load %arg21[%c0_92, %c0_93] : memref<1x32xf32, #tpu.memory_space<vmem>>, vector<1x32xf32>
    %c0_94 = arith.constant 0 : index
    %c0_95 = arith.constant 0 : index
    %298 = vector.load %arg22[%c0_94, %c0_95] : memref<32x32xf32, #tpu.memory_space<vmem>>, vector<32x32xf32>
    %c0_96 = arith.constant 0 : index
    %c0_97 = arith.constant 0 : index
    %299 = vector.load %arg23[%c0_96, %c0_97] : memref<1x32xf32, #tpu.memory_space<vmem>>, vector<1x32xf32>
    %c0_98 = arith.constant 0 : index
    %c0_99 = arith.constant 0 : index
    %300 = vector.load %arg24[%c0_98, %c0_99] : memref<48x32xf32, #tpu.memory_space<vmem>>, vector<48x32xf32>
    %c0_100 = arith.constant 0 : index
    %c0_101 = arith.constant 0 : index
    %301 = vector.load %arg25[%c0_100, %c0_101] : memref<1x1xf32, #tpu.memory_space<vmem>>, vector<1x1xf32>
    %302 = tpu.iota {dimensions = array<i32: 0>} : vector<40x40xi32>
    %303 = tpu.iota {dimensions = array<i32: 1>} : vector<40x40xi32>
    %304 = arith.cmpi eq, %302, %303 : vector<40x40xi32>
    %305 = arith.extui %304 : vector<40x40xi1> to vector<40x40xi32>
    %306 = arith.sitofp %305 : vector<40x40xi32> to vector<40x40xf32>
    %cst_102 = arith.constant dense<0.000000e+00> : vector<8x20xf32>
    %307 = tpu.matmul %281, %280, %cst_102 {dimension_numbers = #tpu.dot_dimension_numbers<[1], [0], [0], [1], [0, 0, 1, 1], [], []>} : vector<8x8xf32>, vector<8x20xf32>, vector<8x20xf32> -> vector<8x20xf32>
    %308 = math.absf %307 : vector<8x20xf32>
    %cst_103 = arith.constant 9.99999996E-13 : f32
    %309 = vector.broadcast %cst_103 : f32 to vector<8x20xf32>
    %310 = arith.maximumf %308, %309 : vector<8x20xf32>
    %311 = math.rsqrt %310 : vector<8x20xf32>
    %312 = arith.mulf %307, %311 : vector<8x20xf32>
    %313 = tpu.concatenate %280, %312 in 1 : vector<8x20xf32>, vector<8x20xf32> -> vector<8x40xf32>
    %314 = arith.mulf %313, %313 : vector<8x40xf32>
    %315 = vector.shape_cast %314 : vector<8x40xf32> to vector<1x8x40xf32>
    %cst_104 = arith.constant dense<0.000000e+00> : vector<1xf32>
    %316 = vector.multi_reduction <add>, %315, %cst_104 [1, 2] : vector<1x8x40xf32> to vector<1xf32>
    %317 = vector.shape_cast %316 : vector<1xf32> to vector<1x1x1xf32>
    %318 = vector.extract %317[0, 0, 0] : f32 from vector<1x1x1xf32>
    %319 = math.rsqrt %318 : f32
    %320 = vector.broadcast %319 : f32 to vector<8x40xf32>
    %321 = arith.mulf %313, %320 : vector<8x40xf32>
    %cst_105 = arith.constant dense<0.000000e+00> : vector<40x8xf32>
    %322 = tpu.matmul %306, %321, %cst_105 {dimension_numbers = #tpu.dot_dimension_numbers<[1], [1], [0], [0], [0, 0, 1, 0], [], []>} : vector<40x40xf32>, vector<8x40xf32>, vector<40x8xf32> -> vector<40x8xf32>
    %cst_106 = arith.constant dense<0.000000e+00> : vector<40x16xf32>
    %323 = tpu.matmul %322, %282, %cst_106 {dimension_numbers = #tpu.dot_dimension_numbers<[1], [0], [0], [1], [0, 0, 1, 1], [], []>} : vector<40x8xf32>, vector<8x16xf32>, vector<40x16xf32> -> vector<40x16xf32>
    %324 = vector.broadcast %283 : vector<1x16xf32> to vector<40x16xf32>
    %325 = arith.addf %323, %324 : vector<40x16xf32>
    %326 = math.tanh %325 : vector<40x16xf32>
    %cst_107 = arith.constant dense<0.000000e+00> : vector<40x40xf32>
    %327 = tpu.matmul %326, %284, %cst_107 {dimension_numbers = #tpu.dot_dimension_numbers<[1], [0], [0], [1], [0, 0, 1, 1], [], []>} : vector<40x16xf32>, vector<16x40xf32>, vector<40x40xf32> -> vector<40x40xf32>
    %328 = vector.broadcast %285 : vector<1x40xf32> to vector<40x40xf32>
    %329 = arith.addf %327, %328 : vector<40x40xf32>
    %cst_108 = arith.constant dense<0.000000e+00> : vector<8x16xf32>
    %330 = tpu.matmul %321, %286, %cst_108 {dimension_numbers = #tpu.dot_dimension_numbers<[1], [0], [0], [1], [0, 0, 1, 1], [], []>} : vector<8x40xf32>, vector<40x16xf32>, vector<8x16xf32> -> vector<8x16xf32>
    %331 = vector.broadcast %287 : vector<1x16xf32> to vector<8x16xf32>
    %332 = arith.addf %330, %331 : vector<8x16xf32>
    %333 = math.tanh %332 : vector<8x16xf32>
    %cst_109 = arith.constant dense<0.000000e+00> : vector<8x8xf32>
    %334 = tpu.matmul %333, %288, %cst_109 {dimension_numbers = #tpu.dot_dimension_numbers<[1], [0], [0], [1], [0, 0, 1, 1], [], []>} : vector<8x16xf32>, vector<16x8xf32>, vector<8x8xf32> -> vector<8x8xf32>
    %335 = vector.broadcast %289 : vector<1x8xf32> to vector<8x8xf32>
    %336 = arith.addf %334, %335 : vector<8x8xf32>
    %cst_110 = arith.constant dense<0.000000e+00> : vector<40x8xf32>
    %337 = tpu.matmul %329, %322, %cst_110 {dimension_numbers = #tpu.dot_dimension_numbers<[1], [0], [0], [1], [0, 0, 1, 1], [], []>} : vector<40x40xf32>, vector<40x8xf32>, vector<40x8xf32> -> vector<40x8xf32>
    %cst_111 = arith.constant dense<0.000000e+00> : vector<40x32xf32>
    %338 = tpu.matmul %337, %290, %cst_111 {dimension_numbers = #tpu.dot_dimension_numbers<[1], [0], [0], [1], [0, 0, 1, 1], [], []>} : vector<40x8xf32>, vector<8x32xf32>, vector<40x32xf32> -> vector<40x32xf32>
    %339 = vector.broadcast %291 : vector<1x32xf32> to vector<40x32xf32>
    %340 = arith.addf %338, %339 : vector<40x32xf32>
    %cst_112 = arith.constant 0.000000e+00 : f32
    %341 = vector.broadcast %cst_112 : f32 to vector<40x32xf32>
    %342 = arith.cmpf oge, %340, %341 : vector<40x32xf32>
    %cst_113 = arith.constant 0.00999999977 : f32
    %343 = vector.broadcast %cst_113 : f32 to vector<40x32xf32>
    %344 = arith.mulf %343, %340 : vector<40x32xf32>
    %345 = arith.select %342, %340, %344 : vector<40x32xi1>, vector<40x32xf32>
    %cst_114 = arith.constant dense<0.000000e+00> : vector<8x40xf32>
    %346 = tpu.matmul %336, %321, %cst_114 {dimension_numbers = #tpu.dot_dimension_numbers<[1], [0], [0], [1], [0, 0, 1, 1], [], []>} : vector<8x8xf32>, vector<8x40xf32>, vector<8x40xf32> -> vector<8x40xf32>
    %cst_115 = arith.constant dense<0.000000e+00> : vector<8x32xf32>
    %347 = tpu.matmul %346, %292, %cst_115 {dimension_numbers = #tpu.dot_dimension_numbers<[1], [0], [0], [1], [0, 0, 1, 1], [], []>} : vector<8x40xf32>, vector<40x32xf32>, vector<8x32xf32> -> vector<8x32xf32>
    %348 = vector.broadcast %293 : vector<1x32xf32> to vector<8x32xf32>
    %349 = arith.addf %347, %348 : vector<8x32xf32>
    %cst_116 = arith.constant 0.000000e+00 : f32
    %350 = vector.broadcast %cst_116 : f32 to vector<8x32xf32>
    %351 = arith.cmpf oge, %349, %350 : vector<8x32xf32>
    %cst_117 = arith.constant 0.00999999977 : f32
    %352 = vector.broadcast %cst_117 : f32 to vector<8x32xf32>
    %353 = arith.mulf %352, %349 : vector<8x32xf32>
    %354 = arith.select %351, %349, %353 : vector<8x32xi1>, vector<8x32xf32>
    %355 = tpu.concatenate %345, %354 in 0 : vector<40x32xf32>, vector<8x32xf32> -> vector<48x32xf32>
    %cst_118 = arith.constant dense<0.000000e+00> : vector<48x32xf32>
    %356 = tpu.matmul %355, %294, %cst_118 {dimension_numbers = #tpu.dot_dimension_numbers<[1], [0], [0], [1], [0, 0, 1, 1], [], []>} : vector<48x32xf32>, vector<32x32xf32>, vector<48x32xf32> -> vector<48x32xf32>
    %357 = vector.broadcast %295 : vector<1x32xf32> to vector<48x32xf32>
    %358 = arith.addf %356, %357 : vector<48x32xf32>
    %cst_119 = arith.constant dense<0.000000e+00> : vector<48x32xf32>
    %359 = tpu.matmul %355, %296, %cst_119 {dimension_numbers = #tpu.dot_dimension_numbers<[1], [0], [0], [1], [0, 0, 1, 1], [], []>} : vector<48x32xf32>, vector<32x32xf32>, vector<48x32xf32> -> vector<48x32xf32>
    %360 = vector.broadcast %297 : vector<1x32xf32> to vector<48x32xf32>
    %361 = arith.addf %359, %360 : vector<48x32xf32>
    %cst_120 = arith.constant dense<0.000000e+00> : vector<48x32xf32>
    %362 = tpu.matmul %355, %298, %cst_120 {dimension_numbers = #tpu.dot_dimension_numbers<[1], [0], [0], [1], [0, 0, 1, 1], [], []>} : vector<48x32xf32>, vector<32x32xf32>, vector<48x32xf32> -> vector<48x32xf32>
    %363 = vector.broadcast %299 : vector<1x32xf32> to vector<48x32xf32>
    %364 = arith.addf %362, %363 : vector<48x32xf32>
    %cst_121 = arith.constant dense<0.000000e+00> : vector<48x48xf32>
    %365 = tpu.matmul %358, %361, %cst_121 {dimension_numbers = #tpu.dot_dimension_numbers<[1], [1], [0], [0], [0, 0, 1, 0], [], []>} : vector<48x32xf32>, vector<48x32xf32>, vector<48x48xf32> -> vector<48x48xf32>
    %cst_122 = arith.constant 0.176776692 : f32
    %366 = vector.broadcast %cst_122 : f32 to vector<48x48xf32>
    %367 = arith.mulf %365, %366 : vector<48x48xf32>
    %cst_123 = arith.constant dense<0xFF800000> : vector<48xf32>
    %368 = vector.multi_reduction <maximumf>, %367, %cst_123 [1] : vector<48x48xf32> to vector<48xf32>
    %369 = vector.shape_cast %368 : vector<48xf32> to vector<48x1xf32>
    %370 = vector.broadcast %369 : vector<48x1xf32> to vector<48x48xf32>
    %371 = arith.subf %367, %370 : vector<48x48xf32>
    %372 = math.exp %371 : vector<48x48xf32>
    %cst_124 = arith.constant dense<0.000000e+00> : vector<48xf32>
    %373 = vector.multi_reduction <add>, %372, %cst_124 [1] : vector<48x48xf32> to vector<48xf32>
    %374 = vector.shape_cast %373 : vector<48xf32> to vector<48x1xf32>
    %375 = tpu.reciprocal %374 {approx = true} : vector<48x1xf32> -> vector<48x1xf32>
    %376 = vector.broadcast %375 : vector<48x1xf32> to vector<48x48xf32>
    %377 = arith.mulf %372, %376 : vector<48x48xf32>
    %cst_125 = arith.constant dense<0.000000e+00> : vector<48x32xf32>
    %378 = tpu.matmul %377, %364, %cst_125 {dimension_numbers = #tpu.dot_dimension_numbers<[1], [0], [0], [1], [0, 0, 1, 1], [], []>} : vector<48x48xf32>, vector<48x32xf32>, vector<48x32xf32> -> vector<48x32xf32>
    %379 = arith.mulf %378, %300 : vector<48x32xf32>
    %380 = vector.shape_cast %379 : vector<48x32xf32> to vector<1x48x32xf32>
    %cst_126 = arith.constant dense<0.000000e+00> : vector<1xf32>
    %381 = vector.multi_reduction <add>, %380, %cst_126 [1, 2] : vector<1x48x32xf32> to vector<1xf32>
    %382 = vector.shape_cast %381 : vector<1xf32> to vector<1x1x1xf32>
    %383 = vector.extract %382[0, 0, 0] : f32 from vector<1x1x1xf32>
    %384 = vector.broadcast %383 : f32 to vector<1x1xf32>
    %385 = arith.addf %384, %301 : vector<1x1xf32>
    %c0_127 = arith.constant 0 : index
    %c0_128 = arith.constant 0 : index
    %c0_129 = arith.constant 0 : index
    %386 = vector.load %arg26[%c0_127, %c0_128, %c0_129] : memref<1x1x1xf32, #tpu.memory_space<vmem>>, vector<1x1x1xf32>
    %387 = vector.shape_cast %386 : vector<1x1x1xf32> to vector<1x1xf32>
    %388 = vector.shape_cast %385 : vector<1x1xf32> to vector<1x1x1xf32>
    tpu.vector_store %arg26[%c0_127, %c0_128, %c0_129], %388 {strides = array<i32>} : memref<1x1x1xf32, #tpu.memory_space<vmem>>, vector<1x1x1xf32>,
    return
  }
  func.func @transform_0(%arg0: i32) -> (i32, i32, i32) {
    %c0_i32 = arith.constant 0 : i32
    %c0_i32_0 = arith.constant 0 : i32
    %c0_i32_1 = arith.constant 0 : i32
    return %arg0, %c0_i32, %c0_i32_0 : i32, i32, i32
  }
  func.func @transform_1(%arg0: i32) -> (i32, i32, i32) {
    %c0_i32 = arith.constant 0 : i32
    %c0_i32_0 = arith.constant 0 : i32
    %c0_i32_1 = arith.constant 0 : i32
    return %arg0, %c0_i32, %c0_i32_0 : i32, i32, i32
  }
  func.func @transform_2(%arg0: i32) -> (i32, i32) {
    %c0_i32 = arith.constant 0 : i32
    %c0_i32_0 = arith.constant 0 : i32
    %c0_i32_1 = arith.constant 0 : i32
    return %c0_i32, %c0_i32_0 : i32, i32
  }
  func.func @transform_3(%arg0: i32) -> (i32, i32) {
    %c0_i32 = arith.constant 0 : i32
    %c0_i32_0 = arith.constant 0 : i32
    %c0_i32_1 = arith.constant 0 : i32
    return %c0_i32, %c0_i32_0 : i32, i32
  }
  func.func @transform_4(%arg0: i32) -> (i32, i32) {
    %c0_i32 = arith.constant 0 : i32
    %c0_i32_0 = arith.constant 0 : i32
    %c0_i32_1 = arith.constant 0 : i32
    return %c0_i32, %c0_i32_0 : i32, i32
  }
  func.func @transform_5(%arg0: i32) -> (i32, i32) {
    %c0_i32 = arith.constant 0 : i32
    %c0_i32_0 = arith.constant 0 : i32
    %c0_i32_1 = arith.constant 0 : i32
    return %c0_i32, %c0_i32_0 : i32, i32
  }
  func.func @transform_6(%arg0: i32) -> (i32, i32) {
    %c0_i32 = arith.constant 0 : i32
    %c0_i32_0 = arith.constant 0 : i32
    %c0_i32_1 = arith.constant 0 : i32
    return %c0_i32, %c0_i32_0 : i32, i32
  }
  func.func @transform_7(%arg0: i32) -> (i32, i32) {
    %c0_i32 = arith.constant 0 : i32
    %c0_i32_0 = arith.constant 0 : i32
    %c0_i32_1 = arith.constant 0 : i32
    return %c0_i32, %c0_i32_0 : i32, i32
  }
  func.func @transform_8(%arg0: i32) -> (i32, i32) {
    %c0_i32 = arith.constant 0 : i32
    %c0_i32_0 = arith.constant 0 : i32
    %c0_i32_1 = arith.constant 0 : i32
    return %c0_i32, %c0_i32_0 : i32, i32
  }
  func.func @transform_9(%arg0: i32) -> (i32, i32) {
    %c0_i32 = arith.constant 0 : i32
    %c0_i32_0 = arith.constant 0 : i32
    %c0_i32_1 = arith.constant 0 : i32
    return %c0_i32, %c0_i32_0 : i32, i32
  }
  func.func @transform_10(%arg0: i32) -> (i32, i32) {
    %c0_i32 = arith.constant 0 : i32
    %c0_i32_0 = arith.constant 0 : i32
    %c0_i32_1 = arith.constant 0 : i32
    return %c0_i32, %c0_i32_0 : i32, i32
  }
  func.func @transform_11(%arg0: i32) -> (i32, i32) {
    %c0_i32 = arith.constant 0 : i32
    %c0_i32_0 = arith.constant 0 : i32
    %c0_i32_1 = arith.constant 0 : i32
    return %c0_i32, %c0_i32_0 : i32, i32
  }
  func.func @transform_12(%arg0: i32) -> (i32, i32) {
    %c0_i32 = arith.constant 0 : i32
    %c0_i32_0 = arith.constant 0 : i32
    %c0_i32_1 = arith.constant 0 : i32
    return %c0_i32, %c0_i32_0 : i32, i32
  }
  func.func @transform_13(%arg0: i32) -> (i32, i32) {
    %c0_i32 = arith.constant 0 : i32
    %c0_i32_0 = arith.constant 0 : i32
    %c0_i32_1 = arith.constant 0 : i32
    return %c0_i32, %c0_i32_0 : i32, i32
  }
  func.func @transform_14(%arg0: i32) -> (i32, i32) {
    %c0_i32 = arith.constant 0 : i32
    %c0_i32_0 = arith.constant 0 : i32
    %c0_i32_1 = arith.constant 0 : i32
    return %c0_i32, %c0_i32_0 : i32, i32
  }
  func.func @transform_15(%arg0: i32) -> (i32, i32) {
    %c0_i32 = arith.constant 0 : i32
    %c0_i32_0 = arith.constant 0 : i32
    %c0_i32_1 = arith.constant 0 : i32
    return %c0_i32, %c0_i32_0 : i32, i32
  }
  func.func @transform_16(%arg0: i32) -> (i32, i32) {
    %c0_i32 = arith.constant 0 : i32
    %c0_i32_0 = arith.constant 0 : i32
    %c0_i32_1 = arith.constant 0 : i32
    return %c0_i32, %c0_i32_0 : i32, i32
  }
  func.func @transform_17(%arg0: i32) -> (i32, i32) {
    %c0_i32 = arith.constant 0 : i32
    %c0_i32_0 = arith.constant 0 : i32
    %c0_i32_1 = arith.constant 0 : i32
    return %c0_i32, %c0_i32_0 : i32, i32
  }
  func.func @transform_18(%arg0: i32) -> (i32, i32) {
    %c0_i32 = arith.constant 0 : i32
    %c0_i32_0 = arith.constant 0 : i32
    %c0_i32_1 = arith.constant 0 : i32
    return %c0_i32, %c0_i32_0 : i32, i32
  }
  func.func @transform_19(%arg0: i32) -> (i32, i32) {
    %c0_i32 = arith.constant 0 : i32
    %c0_i32_0 = arith.constant 0 : i32
    %c0_i32_1 = arith.constant 0 : i32
    return %c0_i32, %c0_i32_0 : i32, i32
  }
  func.func @transform_20(%arg0: i32) -> (i32, i32) {
    %c0_i32 = arith.constant 0 : i32
    %c0_i32_0 = arith.constant 0 : i32
    %c0_i32_1 = arith.constant 0 : i32
    return %c0_i32, %c0_i32_0 : i32, i32
  }
  func.func @transform_21(%arg0: i32) -> (i32, i32) {
    %c0_i32 = arith.constant 0 : i32
    %c0_i32_0 = arith.constant 0 : i32
    %c0_i32_1 = arith.constant 0 : i32
    return %c0_i32, %c0_i32_0 : i32, i32
  }
  func.func @transform_22(%arg0: i32) -> (i32, i32) {
    %c0_i32 = arith.constant 0 : i32
    %c0_i32_0 = arith.constant 0 : i32
    %c0_i32_1 = arith.constant 0 : i32
    return %c0_i32, %c0_i32_0 : i32, i32
  }
  func.func @transform_23(%arg0: i32) -> (i32, i32) {
    %c0_i32 = arith.constant 0 : i32
    %c0_i32_0 = arith.constant 0 : i32
    %c0_i32_1 = arith.constant 0 : i32
    return %c0_i32, %c0_i32_0 : i32, i32
  }
  func.func @transform_24(%arg0: i32) -> (i32, i32) {
    %c0_i32 = arith.constant 0 : i32
    %c0_i32_0 = arith.constant 0 : i32
    %c0_i32_1 = arith.constant 0 : i32
    return %c0_i32, %c0_i32_0 : i32, i32
  }
  func.func @transform_25(%arg0: i32) -> (i32, i32, i32) {
    %c0_i32 = arith.constant 0 : i32
    %c0_i32_0 = arith.constant 0 : i32
    %c0_i32_1 = arith.constant 0 : i32
    return %arg0, %c0_i32, %c0_i32_0 : i32, i32, i32
  }
}

</mosaic_0001>

<bundles_post_ra>
// kernel: agcn_tf_forward.1
= control target key start
LH: loop header
LB: loop body
LE: loop exit
PB: predicated region body
PF: predicated region fallthrough
CT: control target
= control target key end

     0   :  { %s4683_s0 = inlined_call_operand.vmem [shape: f32[2,8,16], index: 0, kind: input, shape index: {}]   ;;  %s4684_s1 = inlined_call_operand.vmem [shape: f32[2,8,2], index: 1, kind: input, shape index: {}]   ;;  %s4685_s2 = inlined_call_operand.vmem [shape: f32[16,16], index: 2, kind: input, shape index: {}]   ;;  %s4686_s3 = inlined_call_operand.vmem [shape: f32[16,16], index: 3, kind: input, shape index: {}]   ;;  %s4687_s4 = inlined_call_operand.vmem [shape: f32[8,8], index: 4, kind: input, shape index: {}]   ;;  %s4688_s5 = inlined_call_operand.vmem [shape: f32[8,16], index: 5, kind: input, shape index: {}]   ;;  %s4689_s6 = inlined_call_operand.vmem [shape: f32[1,16], index: 6, kind: input, shape index: {}]   ;;  %s4690_s7 = inlined_call_operand.vmem [shape: f32[16,40], index: 7, kind: input, shape index: {}]   ;;  %s4691_s8 = inlined_call_operand.vmem [shape: f32[1,40], index: 8, kind: input, shape index: {}]   ;;  %s4692_s9 = inlined_call_operand.vmem [shape: f32[40,16], index: 9, kind: input, shape index: {}]   ;;  %s4693_s10 = inlined_call_operand.vmem [shape: f32[1,16], index: 10, kind: input, shape index: {}]   ;;  %s4694_s11 = inlined_call_operand.vmem [shape: f32[16,8], index: 11, kind: input, shape index: {}]   ;;  %s4695_s12 = inlined_call_operand.vmem [shape: f32[1,8], index: 12, kind: input, shape index: {}]   ;;  %s4696_s13 = inlined_call_operand.vmem [shape: f32[8,32], index: 13, kind: input, shape index: {}]   ;;  %s4697_s14 = inlined_call_operand.vmem [shape: f32[1,32], index: 14, kind: input, shape index: {}]   ;;  %s4698_s15 = inlined_call_operand.vmem [shape: f32[40,32], index: 15, kind: input, shape index: {}]   ;;  %s4699_s16 = inlined_call_operand.vmem [shape: f32[1,32], index: 16, kind: input, shape index: {}]   ;;  %s4700_s17 = inlined_call_operand.vmem [shape: f32[32,32], index: 17, kind: input, shape index: {}]   ;;  %s4701_s18 = inlined_call_operand.vmem [shape: f32[1,32], index: 18, kind: input, shape index: {}]   ;;  %s4702_s19 = inlined_call_operand.vmem [shape: f32[32,32], index: 19, kind: input, shape index: {}]   ;;  %s4703_s20 = inlined_call_operand.vmem [shape: f32[1,32], index: 20, kind: input, shape index: {}]   ;;  %s4704_s21 = inlined_call_operand.vmem [shape: f32[32,32], index: 21, kind: input, shape index: {}]   ;;  %s4705_s22 = inlined_call_operand.vmem [shape: f32[1,32], index: 22, kind: input, shape index: {}]   ;;  %s4706_s23 = inlined_call_operand.vmem [shape: f32[48,32], index: 23, kind: input, shape index: {}]   ;;  %s4707_s24 = inlined_call_operand.<no memory space> [shape: f32[1,1], index: 24, kind: input, shape index: {}]   ;;  %s4708_s25 = inlined_call_operand.vmem [shape: f32[2,1,1], index: 25, kind: output, shape index: {}]  }
   0x1   :  { %4722 = sst [smem:[#allocation3_spill]] %s4683_s0  ;;  %v30_v0 = vstv %s4707_s24 }
   0x2   :  { %4723 = sst [smem:[#allocation4_spill]] %s4684_s1  ;;  %31 = vst [vmem:[#allocation2] sm:$0x1] %v30_v0 }
   0x3   :  { %4724 = sst [smem:[#allocation5_spill]] %s4685_s2 }
   0x4   :  { %4725 = sst [smem:[#allocation6_spill]] %s4686_s3 }
   0x5   :  { %4726 = sst [smem:[#allocation7_spill]] %s4687_s4 }
   0x6   :  { %4727 = sst [smem:[#allocation8_spill]] %s4688_s5 }
   0x7   :  { %4728 = sst [smem:[#allocation9_spill]] %s4689_s6  ;;  %s3983_s6 = smov 0  }
   0x8   :  { %4729 = sst [smem:[#allocation10_spill]] %s4690_s7 }
   0x9   :  { %4730 = sst [smem:[#allocation11_spill]] %s4691_s8 }
   0xa   :  { %4731 = sst [smem:[#allocation12_spill]] %s4692_s9 }
   0xb LB: > { %s3175_s30 = sadd.s32 4294967295, %s3826_s6   ;;  %p3179_p0 = scmp.ge.s32.totalorder %s3826_s6, 1  ;;  %s3826_s6 = sphi %s3983_s6, %s37_s6  }
   0xc   : > { %p697_p1 = scmp.lt.s32.totalorder %s3826_s6, 3 }
   0xe   : > { %p698_p2 = pnand %p3179_p0, %p697_p1 }
   0xf   : > { %s4732_s26 = sld [smem:[#allocation5_spill]] (!%p698_p2)  ;;  %s4733_s4 = sld [smem:[#allocation6_spill]] (!%p698_p2)  ;;  %v779_v4 = vlaneseq (!%p698_p2)  ;;  %v3828_v5 = vmov (!%p698_p2), 0.0|0.0   ;;  %vm4719_vm0 = vmmov (!%p698_p2), 0   ;;  %v3830_v9 = vmov (!%p698_p2), 0.0  }
  0x10   : > { %701 = sbr.rel (%p698_p2) target bundleno = 3842 (0xf02), region = 120  ;;  %3644 = vmatprep.subr.bf16.mxu0 (!%p698_p2), %v3828_v5  ;;  %3647 = vmatprep.subr.bf16.mxu1 (!%p698_p2), %v3828_v5  ;;  %p766_p3 = scmp.lt.s32.totalorder (!%p698_p2), %s3175_s30, 1  ;;  %vm4721_vm3 = vcmask (!%p698_p2), 130048   ;;  %v3831_v11 = vmov (!%p698_p2), 0  }
  0x11   : > { %3403 = vmatprep.mubr.msk.f32.mxu0 (!%p698_p2), %vm4719_vm0, %v3830_v9  ;;  %3410 = vmatprep.mubr.msk.f32.mxu1 (!%p698_p2), %vm4719_vm0, %v3830_v9  ;;  %v4010_v10 = vand.u32 (!%p698_p2), 127, %v779_v4  ;;  %s4734_s2 = sld [smem:[#allocation3_spill]] (!%p698_p2)  ;;  %s4714_s3 = smov (!%p698_p2), 14  }
  0x12   : > { %s4716_s24 = smov (!%p698_p2), 13   ;;  %s3834_s1 = smov (!%p698_p2), 12  }
  0x13   : > { %vm1083_vm1 = vcmp.ge.s32.totalorder (!%p698_p2), %v4010_v10, 2  ;;  %vm1102_vm2 = vcmp.ge.s32.totalorder (!%p698_p2), %v4010_v10, 3  ;;  %vm1121_vm4 = vcmp.ge.s32.totalorder (!%p698_p2), %v4010_v10, 4  ;;  %vm1140_vm5 = vcmp.ge.s32.totalorder (!%p698_p2), %v4010_v10, 5  ;;  %s3835_s8 = smov (!%p698_p2), 11   ;;  %s3836_s27 = smov (!%p698_p2), 10  }
  0x14   : > { %v1089_v12 = vsel (!%p698_p2), %vm1083_vm1, 1, %v3831_v11  ;;  %v1108_v14 = vsel (!%p698_p2), %vm1102_vm2, 1, %v3831_v11  ;;  %v1127_v15 = vsel (!%p698_p2), %vm1121_vm4, 1, %v3831_v11  ;;  %v1146_v16 = vsel (!%p698_p2), %vm1140_vm5, 1, %v3831_v11  ;;  %s3837_s28 = smov (!%p698_p2), 9   ;;  %s4717_s9 = smov (!%p698_p2), 8  }
  0x15   : > { %v857_v1 = vld [vmem:[%s4732_s26] sm:$0xff] (!%p698_p2)  ;;  %v858_v2 = vld [vmem:[%s4732_s26 + $0x8] sm:$0xff] (!%p698_p2)  ;;  %1090 = vrot.lane.b32.xlu1 (!%p698_p2), %v1089_v12, %s4714_s3  ;;  %vm1159_vm6 = vcmp.ge.s32.totalorder (!%p698_p2), %v4010_v10, 6  ;;  %vm1178_vm7 = vcmp.ge.s32.totalorder (!%p698_p2), %v4010_v10, 7  ;;  %vm1197_vm8 = vcmp.ge.s32.totalorder (!%p698_p2), %v4010_v10, 8  ;;  %vm1216_vm9 = vcmp.ge.s32.totalorder (!%p698_p2), %v4010_v10, 9 }
  0x16   : > { %v932_v3 = vld [vmem:[%s4733_s4] sm:$0xff] (!%p698_p2)  ;;  %v3645_v6 = vpack.c.bf16 (!%p698_p2), %v858_v2, %v857_v1  ;;  %v933_v7 = vld [vmem:[%s4733_s4 + $0x8] sm:$0xff] (!%p698_p2)  ;;  %v1165_v17 = vsel (!%p698_p2), %vm1159_vm6, 1, %v3831_v11  ;;  %v1184_v18 = vsel (!%p698_p2), %vm1178_vm7, 1, %v3831_v11  ;;  %v1203_v19 = vsel (!%p698_p2), %vm1197_vm8, 1, %v3831_v11  ;;  %s4715_s0 = smov (!%p698_p2), 7  }
  0x17   : > { %v3648_v8 = vpack.c.bf16 %v933_v7, %v932_v3  ;;  %s4775_s30 = smov (!%p766_p3, %s3175_s30), 1  ;;  %v1222_v20 = vsel %vm1216_vm9, 1, %v3831_v11  ;;  %vm1235_vm10 = vcmp.ge.s32.totalorder %v4010_v10, 10  ;;  %s3840_s29 = smov 6   ;;  %vm1254_vm11 = vcmp.ge.s32.totalorder %v4010_v10, 11 }
  0x18   : > { %3646 = vmatpush3.bf16.msra.mxu0 %v3645_v6  ;;  %s4713_s5 = sshll.u32 %s4775_s30, 3  ;;  %v1241_v21 = vsel %vm1235_vm10, 1, %v3831_v11  ;;  %v1260_v31 = vsel %vm1254_vm11, 1, %v3831_v11  ;;  %vm1273_vm12 = vcmp.ge.s32.totalorder %v4010_v10, 12  ;;  %vm1292_vm13 = vcmp.ge.s32.totalorder %v4010_v10, 13 }
  0x19   : > { %3649 = vmatpush3.bf16.msra.mxu1 %v3648_v8  ;;  %3413 = vmatprep.subr.mxu0 %v3830_v9  ;;  %s769_s7 = scalar_lea.vmem %s4734_s2, %s4713_s5  ;;  %s3841_s2 = smov 16   ;;  %v1279_v32 = vsel %vm1273_vm12, 1, %v3831_v11  ;;  %v1298_v33 = vsel %vm1292_vm13, 1, %v3831_v11  ;;  %vm1311_vm14 = vcmp.ge.s32.totalorder %v4010_v10, 14  ;;  %vm1330_vm15 = vcmp.ge.s32.totalorder %v4010_v10, 15 }
  0x1a   : > { %3418 = vmatprep.subr.mxu1 %v3830_v9  ;;  %v4026_v13 = vld [vmem:[%s769_s7] sm:$0xff]  ;;  %1109 = vrot.lane.b32.xlu1 %v1108_v14, %s4716_s24  ;;  %s3842_s7 = smov 5   ;;  %s3843_s5 = smov 4   ;;  %v1317_v35 = vsel %vm1311_vm14, 1, %v3831_v11  ;;  %v1336_v36 = vsel %vm1330_vm15, 1, %v3831_v11  ;;  %vm1067_vm1 = vcmp.ge.s32.totalorder %v4010_v10, 1  ;;  %v4110_v37 = vcvt.s32.f32 %v4010_v10 }
  0x1b   : > { %3404 = vmatmul.mubr.msk.f32.vlgmr.msra.gmra.mrb[0].mxu0 %vm4721_vm3, %v4026_v13  ;;  %v787_v34 = vsel %vm4721_vm3, %v4026_v13, -inf  ;;  %v1074_v38 = vsel %vm1067_vm1, 1, %v3831_v11  ;;  %vm782_vm2 = vcmp.lt.s32.totalorder %v4010_v10, 8  ;;  %vm1060_vm4 = vcmask 1047680  }
  0x1c   : > { %3411 = vmatmul.mubr.msk.f32.vlgmr.msra.gmra.mrb[0].mxu1 %vm4721_vm3, %v4026_v13  ;;  %3415 = vmatprep.mubr.msk.f32.mxu0 %vm4719_vm0, %v3830_v9  ;;  %v3182_v39 = vadd.f32 -16.0, %v4110_v37 }
  0x1d   : > { %3420 = vmatprep.mubr.msk.f32.mxu1 %vm4719_vm0, %v3830_v9 }
  0x1e   : > { %1128 = vrot.lane.b32.xlu1 %v1127_v15, %s3834_s1  ;;  %v784_v40 = vsel %vm782_vm2, %v4110_v37, %v3182_v39 }
  0x1f   : > { %v4119_v41 = vmul.f32 0.0625, %v784_v40 }
  0x22   : > { %1147 = vrot.lane.b32.xlu1 %v1146_v16, %s3835_s8 }
  0x26   : > { %1166 = vrot.lane.b32.xlu1 %v1165_v17, %s3836_s27 }
  0x2a   : > { %1185 = vrot.lane.b32.xlu1 %v1184_v18, %s3837_s28 }
  0x2e   : > { %1204 = vrot.lane.b32.xlu1 %v1203_v19, %s4717_s9 }
  0x32   : > { %1223 = vrot.lane.b32.xlu1 %v1222_v20, %s4715_s0 }
  0x36   : > { %1242 = vrot.lane.b32.xlu1 %v1241_v21, %s3840_s29 }
  0x87   : > { %v1091_v44 = vpop.permute.xlu1 %1090 }
  0x88   : > { %vm1092_vm6 = vcmp.ne.s32.totalorder %v1091_v44, 0 }
  0x8c   : > { %v1110_v45 = vpop.permute.xlu1 %1109 }
  0x8d   : > { %vm1111_vm2 = vcmp.ne.s32.totalorder %v1110_v45, 0 }
  0x90   : > { %v4128_v46 = vpop.permute.xlu1 %1128 }
  0x94   : > { %v1148_v47 = vpop.permute.xlu1 %1147 }
  0x95   : > { %vm1149_vm12 = vcmp.ne.s32.totalorder %v1148_v47, 0 }
  0x98   : > { %v4130_v48 = vpop.permute.xlu1 %1166 }
  0x99   : > { %vm1168_vm0 = vcmp.ne.s32.totalorder %v4130_v48, 0 }
  0x9c   : > { %v4132_v49 = vpop.permute.xlu1 %1185 }
  0xa0   : > { %v4139_v52 = vpop.permute.xlu1 %1204 }
  0xa4   : > { %v4146_v56 = vpop.permute.xlu1 %1223 }
  0xa8   : > { %v1243_v58 = vpop.permute.xlu1 %1242 }
  0xee   : > { %v928_v22 = vpop.f32.mrb[0].mxu0 }
  0xef   : > { %v1000_v23 = vpop.f32.mrb[0].mxu1  ;;  %v1004_v24 = vmul.f32 %v928_v22, %v928_v22  ;;  %v3405_v26 = vpop.f32.mrb[1].mxu0 }
  0xf0   : > { %v1005_v25 = vmul.f32 %v1000_v23, %v1000_v23  ;;  %v3412_v27 = vpop.f32.mrb[1].mxu1 }
  0xf2   : > { %v4059_v28 = vadd.f32 %v1005_v25, %v1004_v24 }
  0xf4   : > { %v4062_v29 = vmul.f32 0.0625, %v4059_v28  ;;  %v1040_v30 = vsel %vm4721_vm3, %v4059_v28, -inf }
  0xf6   : > { %1084 = vrot.lane.b32.xlu1 %v4062_v29, %s4714_s3  ;;  %1061 = vrot.lane.b32.xlu0 %v4062_v29, %s3841_s2  ;;  %s3844_s3 = smov 3   ;;  %v1025_v44 = vmul.f32 %v4062_v29, %v4062_v29 }
  0xfa   : > { %1122 = vrot.lane.b32.xlu1 %v4062_v29, %s3834_s1 }
  0xfe   : > { %1141 = vrot.lane.b32.xlu1 %v4062_v29, %s3835_s8 }
 0x102   : > { %1160 = vrot.lane.b32.xlu1 %v4062_v29, %s3836_s27 }
 0x106   : > { %1179 = vrot.lane.b32.xlu1 %v4062_v29, %s3837_s28 }
 0x10a   : > { %1217 = vrot.lane.b32.xlu1 %v4062_v29, %s4715_s0  ;;  %s3845_s0 = smov 2  }
 0x10e   : > { %1236 = vrot.lane.b32.xlu1 %v4062_v29, %s3840_s29 }
 0x112   : > { %1255 = vrot.lane.b32.xlu1 %v4062_v29, %s3842_s7 }
 0x115   : > { %1041 = vmax.xlane.f32.xlu0 %v1040_v30 }
 0x116   : > { %1274 = vrot.lane.b32.xlu1 %v4062_v29, %s3843_s5 }
 0x11a   : > { %1293 = vrot.lane.b32.xlu1 %v4062_v29, %s3844_s3 }
 0x12b   : > { %1261 = vrot.lane.b32.xlu0 %v1260_v31, %s3842_s7 }
 0x12f   : > { %1280 = vrot.lane.b32.xlu0 %v1279_v32, %s3843_s5 }
 0x133   : > { %1299 = vrot.lane.b32.xlu0 %v1298_v33, %s3844_s3 }
 0x137   : > { %1103 = vrot.lane.b32.xlu0 %v4062_v29, %s4716_s24  ;;  %s3846_s24 = smov 1  }
 0x13b   : > { %1198 = vrot.lane.b32.xlu0 %v4062_v29, %s4717_s9  ;;  %s3847_s9 = smov 15  }
 0x13e   : > { %788 = vmax.xlane.f32.xlu1 %v787_v34 }
 0x13f   : > { %1318 = vrot.lane.b32.xlu0 %v1317_v35, %s3845_s0 }
 0x143   : > { %1337 = vrot.lane.b32.xlu0 %v1336_v36, %s3846_s24 }
 0x147   : > { %1075 = vrot.lane.b32.xlu0 %v1074_v38, %s3847_s9 }
 0x14b   : > { %1312 = vrot.lane.b32.xlu0 %v4062_v29, %s3845_s0 }
 0x14f   : > { %1331 = vrot.lane.b32.xlu0 %v4062_v29, %s3846_s24  ;;  %1351 = vrot.lane.b32.xlu1 %v4119_v41, %s3847_s9 }
 0x153   : > { %1069 = vrot.lane.b32.xlu0 %v4062_v29, %s3847_s9  ;;  %s4764_s9 = sld [smem:[#allocation9_spill]] }
 0x168   : > { %v1062_v42 = vpop.permute.xlu0 %1061  ;;  %v1085_v61 = vpop.permute.xlu1 %1084 }
 0x169   : > { %v1063_v43 = vsel %vm1060_vm4, %v1062_v42, %v4062_v29 }
 0x16a   : > { %1064 = vrot.lane.b32.xlu0 %v1063_v43, %s3841_s2 }
 0x16c   : > { %v1123_v63 = vpop.permute.xlu1 %1122 }
 0x170   : > { %v1142_v1 = vpop.permute.xlu1 %1141 }
 0x174   : > { %v1161_v3 = vpop.permute.xlu1 %1160 }
 0x178   : > { %v4160_v7 = vpop.permute.xlu1 %1179 }
 0x17c   : > { %v4164_v11 = vpop.permute.xlu1 %1217 }
 0x180   : > { %v1237_v14 = vpop.permute.xlu1 %1236 }
 0x184   : > { %v1256_v17 = vpop.permute.xlu1 %1255 }
 0x188   : > { %v1275_v21 = vpop.permute.xlu1 %1274 }
 0x18c   : > { %v1294_v25 = vpop.permute.xlu1 %1293 }
 0x1a2   : > { %v4134_v50 = vpop.xlane.xlu0 %1041 }
 0x1a3   : > { %vm1050_vm5 = vcmp.eq.f32.partialorder %v4059_v28, %v4134_v50 }
 0x1a4   : > { %v1051_v51 = vsel %vm1050_vm5, %v4110_v37, 16.0 }
 0x1a5   : > { %v1052_v53 = vsel %vm4721_vm3, %v1051_v51, inf }
 0x1a6   : > { %1053 = vmin.xlane.f32.xlu0 %v1052_v53  ;;  %v4142_v54 = vpop.permute.xlu0 %1261 }
 0x1aa   : > { %v4144_v55 = vpop.permute.xlu0 %1280 }
 0x1ae   : > { %v4148_v57 = vpop.permute.xlu0 %1299 }
 0x1b2   : > { %v1104_v59 = vpop.permute.xlu0 %1103 }
 0x1b6   : > { %v4150_v60 = vpop.permute.xlu0 %1198 }
 0x1ba   : > { %v4152_v62 = vpop.permute.xlu0 %1318 }
 0x1be   : > { %v4154_v0 = vpop.permute.xlu0 %1337 }
 0x1c2   : > { %v4156_v2 = vpop.permute.xlu0 %1075 }
 0x1c6   : > { %v4158_v6 = vpop.permute.xlu0 %1312 }
 0x1ca   : > { %v4162_v8 = vpop.permute.xlu0 %1331 }
 0x1cb   : > { %v4263_v36 = vpop.xlane.xlu1 %788 }
 0x1cc   : > { %v4267_v38 = vsub.f32 %v4026_v13, %v4263_v36 }
 0x1ce   : > { %v4166_v12 = vpop.permute.xlu0 %1069  ;;  %v826_v39 = vmul.f32 1.442695, %v4267_v38 }
 0x1d0   : > { %3764 = vpow2.f32 %v826_v39 }
 0x1da   : > { %v4270_v40 = vpop.eup %3764 }
 0x1dc   : > { %v1065_v15 = vpop.permute.xlu0 %1064 }
 0x1dd   : > { %v4170_v16 = vsel %vm1060_vm4, %v1065_v15, %v4062_v29 }
 0x1de   : > { %vm1087_vm7 = vcmp.lt.f32.partialorder %v4170_v16, %v1085_v61  ;;  %vm1088_vm8 = vcmp.eq.f32.partialorder %v4170_v16, %v1085_v61  ;;  %vm1145_vm9 = vcmp.eq.f32.partialorder %v4170_v16, %v1142_v1  ;;  %vm1144_vm11 = vcmp.lt.f32.partialorder %v4170_v16, %v1142_v1 }
 0x1df   : > { %vm1093_vm10 = vmand %vm1088_vm8, %vm1092_vm6  ;;  %vm1107_vm14 = vcmp.eq.f32.partialorder %v4170_v16, %v1104_v59  ;;  %vm1106_vm1 = vcmp.lt.f32.partialorder %v4170_v16, %v1104_v59  ;;  %vm1240_vm5 = vcmp.eq.f32.partialorder %v4170_v16, %v1237_v14  ;;  %vm1239_vm8 = vcmp.lt.f32.partialorder %v4170_v16, %v1237_v14 }
 0x1e0   : > { %vm1094_vm13 = vmor %vm1087_vm7, %vm1093_vm10  ;;  %vm1244_vm7 = vcmp.ne.s32.totalorder %v1243_v58, 0  ;;  %vm1277_vm3 = vcmp.lt.f32.partialorder %v4170_v16, %v1275_v21 }
 0x1e1   : > { %v3188_v18 = vsel %vm1094_vm13, 1.0, %v3830_v9  ;;  %vm1150_vm15 = vmand %vm1145_vm9, %vm1149_vm12  ;;  %vm1126_vm13 = vcmp.eq.f32.partialorder %v4170_v16, %v1123_v63  ;;  %vm1125_vm12 = vcmp.lt.f32.partialorder %v4170_v16, %v1123_v63 }
 0x1e2   : > { %1098 = vrot.lane.b32.xlu0 %v3188_v18, %s3846_s24  ;;  %vm1151_vm4 = vmor %vm1144_vm11, %vm1150_vm15  ;;  %vm1072_vm11 = vcmp.lt.f32.partialorder %v4170_v16, %v4166_v12  ;;  %vm1130_vm15 = vcmp.ne.s32.totalorder %v4128_v46, 0  ;;  %s4737_s24 = smov 8  }
 0x1e3   : > { %v3191_v19 = vsel %vm1151_vm4, 1.0, %v3830_v9  ;;  %vm1112_vm6 = vmand %vm1107_vm14, %vm1111_vm2  ;;  %vm1259_vm2 = vcmp.eq.f32.partialorder %v4170_v16, %v1256_v17 }
 0x1e4   : > { %1155 = vrot.lane.b32.xlu1 %v3191_v19, %s3843_s5  ;;  %vm1113_vm10 = vmor %vm1106_vm1, %vm1112_vm6  ;;  %vm1073_vm1 = vcmp.eq.f32.partialorder %v4170_v16, %v4166_v12  ;;  %vm1263_vm6 = vcmp.ne.s32.totalorder %v4142_v54, 0  ;;  %s4735_s5 = smov 7  }
 0x1e5   : > { %v3189_v20 = vsel %vm1113_vm10, 1.0, %v3830_v9  ;;  %vm1245_vm9 = vmand %vm1240_vm5, %vm1244_vm7  ;;  %vm1258_vm5 = vcmp.lt.f32.partialorder %v4170_v16, %v1256_v17  ;;  %vm1164_vm10 = vcmp.eq.f32.partialorder %v4170_v16, %v1161_v3 }
 0x1e6   : > { %1117 = vrot.lane.b32.xlu0 %v3189_v20, %s3845_s0  ;;  %vm1246_vm14 = vmor %vm1239_vm8, %vm1245_vm9  ;;  %vm1163_vm9 = vcmp.lt.f32.partialorder %v4170_v16, %v1161_v3  ;;  %s4749_s0 = sld [smem:[#allocation4_spill]] }
 0x1e7   : > { %v3196_v22 = vsel %vm1246_vm14, 1.0, %v3830_v9  ;;  %vm1131_vm4 = vmand %vm1126_vm13, %vm1130_vm15  ;;  %vm1278_vm13 = vcmp.eq.f32.partialorder %v4170_v16, %v1275_v21 }
 0x1e8   : > { %1250 = vrot.lane.b32.xlu1 %v3196_v22, %s3837_s28  ;;  %vm1132_vm7 = vmor %vm1125_vm12, %vm1131_vm4  ;;  %vm1282_vm12 = vcmp.ne.s32.totalorder %v4144_v55, 0  ;;  %s4761_s28 = sld [smem:[#allocation8_spill]] }
 0x1e9   : > { %v3190_v23 = vsel %vm1132_vm7, 1.0, %v3830_v9  ;;  %vm1264_vm8 = vmand %vm1259_vm2, %vm1263_vm6  ;;  %vm1183_vm2 = vcmp.eq.f32.partialorder %v4170_v16, %v4160_v7  ;;  %vm1187_vm7 = vcmp.ne.s32.totalorder %v4132_v49, 0  ;;  %v1352_v49 = vpop.permute.xlu1 %1351 }
 0x1ea   : > { %1136 = vrot.lane.b32.xlu0 %v3190_v23, %s3844_s3  ;;  %vm1265_vm14 = vmor %vm1258_vm5, %vm1264_vm8  ;;  %vm1182_vm5 = vcmp.lt.f32.partialorder %v4170_v16, %v4160_v7  ;;  %s4736_s3 = smov 13  }
 0x1eb   : > { %v3197_v24 = vsel %vm1265_vm14, 1.0, %v3830_v9  ;;  %vm1169_vm15 = vmand %vm1164_vm10, %vm1168_vm0  ;;  %vm1297_vm10 = vcmp.eq.f32.partialorder %v4170_v16, %v1294_v25  ;;  %vm1301_vm14 = vcmp.ne.s32.totalorder %v4148_v57, 0 }
 0x1ec   : > { %1269 = vrot.lane.b32.xlu1 %v3197_v24, %s3836_s27  ;;  %vm1170_vm4 = vmor %vm1163_vm9, %vm1169_vm15  ;;  %vm1296_vm9 = vcmp.lt.f32.partialorder %v4170_v16, %v1294_v25  ;;  %vm1202_vm15 = vcmp.eq.f32.partialorder %v4170_v16, %v4150_v60  ;;  %s4748_s27 = sshll.u32 %s4775_s30, 3 }
 0x1ed   : > { %v3192_v26 = vsel %vm1170_vm4, 1.0, %v3830_v9  ;;  %vm1283_vm6 = vmand %vm1278_vm13, %vm1282_vm12  ;;  %vm1206_vm4 = vcmp.ne.s32.totalorder %v4139_v52, 0 }
 0x1ee   : > { %1174 = vrot.lane.b32.xlu0 %v3192_v26, %s3842_s7  ;;  %vm1284_vm0 = vmor %vm1277_vm3, %vm1283_vm6  ;;  %vm1201_vm3 = vcmp.lt.f32.partialorder %v4170_v16, %v4150_v60  ;;  %vm1316_vm6 = vcmp.eq.f32.partialorder %v4170_v16, %v4158_v6 }
 0x1ef   : > { %v3198_v27 = vsel %vm1284_vm0, 1.0, %v3830_v9  ;;  %vm1188_vm8 = vmand %vm1183_vm2, %vm1187_vm7  ;;  %vm1315_vm7 = vcmp.lt.f32.partialorder %v4170_v16, %v4158_v6  ;;  %vm1320_vm0 = vcmp.ne.s32.totalorder %v4152_v62, 0 }
 0x1f0   : > { %1288 = vrot.lane.b32.xlu1 %v3198_v27, %s3835_s8  ;;  %vm1189_vm13 = vmor %vm1182_vm5, %vm1188_vm8  ;;  %vm1221_vm8 = vcmp.eq.f32.partialorder %v4170_v16, %v4164_v11  ;;  %s3848_s8 = smov 113  }
 0x1f1   : > { %v3193_v28 = vsel %vm1189_vm13, 1.0, %v3830_v9  ;;  %vm1302_vm12 = vmand %vm1297_vm10, %vm1301_vm14  ;;  %vm1220_vm14 = vcmp.lt.f32.partialorder %v4170_v16, %v4164_v11  ;;  %vm1225_vm13 = vcmp.ne.s32.totalorder %v4146_v56, 0 }
 0x1f2   : > { %1193 = vrot.lane.b32.xlu0 %v3193_v28, %s3840_s29  ;;  %vm1303_vm2 = vmor %vm1296_vm9, %vm1302_vm12  ;;  %vm1335_vm12 = vcmp.eq.f32.partialorder %v4170_v16, %v4162_v8  ;;  %s773_s29 = scalar_lea.vmem %s4749_s0, %s4748_s27 }
 0x1f3   : > { %v3199_v30 = vsel %vm1303_vm2, 1.0, %v3830_v9  ;;  %vm1207_vm5 = vmand %vm1202_vm15, %vm1206_vm4  ;;  %vm1334_vm4 = vcmp.lt.f32.partialorder %v4170_v16, %v4162_v8  ;;  %vm1339_vm2 = vcmp.ne.s32.totalorder %v4154_v0, 0 }
 0x1f4   : > { %1307 = vrot.lane.b32.xlu1 %v3199_v30, %s3834_s1  ;;  %vm1208_vm10 = vmor %vm1201_vm3, %vm1207_vm5  ;;  %s4738_s1 = smov 14  }
 0x1f5   : > { %v3194_v31 = vsel %vm1208_vm10, 1.0, %v3830_v9  ;;  %vm1321_vm9 = vmand %vm1316_vm6, %vm1320_vm0  ;;  %vm1077_vm0 = vcmp.ne.s32.totalorder %v4156_v2, 0 }
 0x1f6   : > { %1212 = vrot.lane.b32.xlu0 %v3194_v31, %s4735_s5  ;;  %vm1322_vm15 = vmor %vm1315_vm7, %vm1321_vm9  ;;  %s4758_s5 = sld [smem:[#allocation7_spill]] }
 0x1f7   : > { %v3200_v32 = vsel %vm1322_vm15, 1.0, %v3830_v9  ;;  %vm1226_vm3 = vmand %vm1221_vm8, %vm1225_vm13 }
 0x1f8   : > { %1326 = vrot.lane.b32.xlu1 %v3200_v32, %s4736_s3  ;;  %vm1227_vm6 = vmor %vm1220_vm14, %vm1226_vm3  ;;  %vm1017_vm3 = vcmp.lt.f32.partialorder %v4119_v41, 0.5  ;;  %v812_v32 = vmul.f32 %v4026_v13, %v4026_v13  ;;  %s3849_s3 = smov 20  }
 0x1f9   : > { %v3195_v33 = vsel %vm1227_vm6, 1.0, %v3830_v9  ;;  %vm1340_vm5 = vmand %vm1335_vm12, %vm1339_vm2  ;;  %v3186_v23 = vsel %vm1017_vm3, 1.0, %v3830_v9  ;;  %vm1047_vm3 = vcmp.eq.f32.partialorder %v4134_v50, 0.0 }
 0x1fa   : > { %1231 = vrot.lane.b32.xlu0 %v3195_v33, %s4737_s24  ;;  %vm1341_vm7 = vmor %vm1334_vm4, %vm1340_vm5  ;;  %v1020_v25 = vmul.f32 %v3186_v23, %v4062_v29  ;;  %v778_v33 = vld [vmem:[%s773_s29] sm:$0xff]  ;;  %s4762_s29 = sld [smem:[#allocation10_spill]] }
 0x1fb   : > { %v3201_v34 = vsel %vm1341_vm7, 1.0, %v3830_v9  ;;  %vm1078_vm10 = vmand %vm1073_vm1, %vm1077_vm0  ;;  %vm4741_vm1 = vcmask 130048  }
 0x1fc   : > { %1345 = vrot.lane.b32.xlu1 %v3201_v34, %s4738_s1  ;;  %vm4259_vm8 = vmor %vm1072_vm11, %vm1078_vm10  ;;  %v828_v42 = vsel %vm4741_vm1, %v4270_v40, 0.0 }
 0x1fd   : > { %vm4742_vm11 = vmmov %vm4741_vm1  ;;  %v3187_v54 = vsel %vm4259_vm8, 1.0, %v3830_v9 }
 0x1fe   : > { %v1008_v43 = vsel %vm4742_vm11, %v4062_v29, 0.0  ;;  %vm4743_vm9 = vmmov %vm4741_vm1 }
 0x1ff   : > { %v793_v45 = vsel %vm4743_vm9, %v4026_v13, 0.0  ;;  %vm4744_vm14 = vmmov %vm4741_vm1 }
 0x200   : > { %v1026_v46 = vsel %vm4744_vm14, %v1025_v44, 0.0  ;;  %vm4745_vm13 = vmmov %vm4741_vm1 }
 0x201   : > { %v1037_v47 = vsel %vm4745_vm13, %v4062_v29, -inf  ;;  %vm4746_vm4 = vmmov %vm4741_vm1  ;;  %vm1366_vm13 = vcmask 7168  }
 0x202   : > { %vm4747_vm2 = vmmov %vm4741_vm1 }
 0x203   : > { %v1021_v26 = vsel %vm4747_vm2, %v1020_v25, 0.0  ;;  %vm4750_vm6 = vmmov %vm4741_vm1 }
 0x204   : > { %vm4751_vm5 = vmmov %vm4741_vm1 }
 0x205   : > { %v813_v39 = vsel %vm4751_vm5, %v812_v32, 0.0  ;;  %vm4752_vm0 = vmmov %vm4741_vm1 }
 0x206   : > { %vm4753_vm7 = vmmov %vm4752_vm0 }
 0x207   : > { %vm4754_vm10 = vmmov %vm4752_vm0 }
 0x208   : > { %vm4755_vm8 = vmmov %vm4752_vm0 }
 0x209   : > { %vm4756_vm1 = vmmov %vm4752_vm0 }
 0x20a   : > { %vm4757_vm11 = vmmov %vm4752_vm0 }
 0x219   : > { %829 = vadd.xlane.f32.xlu0 %v828_v42 }
 0x21d   : > { %1009 = vadd.xlane.f32.xlu0 %v1008_v43  ;;  %v790_v43 = vsel %vm4752_vm0, %v4026_v13, inf }
 0x220   : > { %794 = vadd.xlane.f32.xlu1 %v793_v45 }
 0x221   : > { %1027 = vadd.xlane.f32.xlu0 %v1026_v46 }
 0x224   : > { %1038 = vmax.xlane.f32.xlu1 %v1037_v47 }
 0x233   : > { %v1054_v48 = vpop.xlane.xlu0 %1053 }
 0x234   : > { %vm1055_vm12 = vcmp.eq.f32.partialorder %v4110_v37, %v1054_v48 }
 0x235   : > { %v1056_v22 = vsel %vm1055_vm12, %v4119_v41, 0.0  ;;  %vm1368_vm12 = vcmask 15360  }
 0x236   : > { %v1057_v24 = vsel %vm4746_vm4, %v1056_v22, 0.0  ;;  %vm1370_vm4 = vcmask 23552  }
 0x254   : > { %v1099_v51 = vpop.permute.xlu0 %1098 }
 0x255   : > { %v1101_v56 = vadd.f32 %v3187_v54, %v1099_v51 }
 0x256   : > { %v1156_v52 = vpop.permute.xlu1 %1155 }
 0x258   : > { %v1118_v53 = vpop.permute.xlu0 %1117 }
 0x259   : > { %v1120_v58 = vadd.f32 %v1118_v53, %v1101_v56 }
 0x25a   : > { %v1251_v55 = vpop.permute.xlu1 %1250 }
 0x25c   : > { %v1137_v57 = vpop.permute.xlu0 %1136 }
 0x25d   : > { %v1139_v59 = vadd.f32 %v1137_v57, %v1120_v58 }
 0x25e   : > { %v1270_v60 = vpop.permute.xlu1 %1269 }
 0x25f   : > { %v1158_v62 = vadd.f32 %v1156_v52, %v1139_v59 }
 0x260   : > { %v1175_v61 = vpop.permute.xlu0 %1174 }
 0x261   : > { %v1177_v1 = vadd.f32 %v1175_v61, %v1158_v62 }
 0x262   : > { %v1289_v0 = vpop.permute.xlu1 %1288 }
 0x264   : > { %v1194_v63 = vpop.permute.xlu0 %1193 }
 0x265   : > { %v1196_v3 = vadd.f32 %v1194_v63, %v1177_v1 }
 0x266   : > { %v1308_v7 = vpop.permute.xlu1 %1307 }
 0x268   : > { %v1213_v2 = vpop.permute.xlu0 %1212 }
 0x269   : > { %v1215_v6 = vadd.f32 %v1213_v2, %v1196_v3  ;;  %v1048_v3 = vand.u32 2147483648, %v4134_v50 }
 0x26a   : > { %v1327_v15 = vpop.permute.xlu1 %1326 }
 0x26c   : > { %v1232_v8 = vpop.permute.xlu0 %1231 }
 0x26d   : > { %v1234_v11 = vadd.f32 %v1232_v8, %v1215_v6 }
 0x26e   : > { %v1346_v19 = vpop.permute.xlu1 %1345 }
 0x26f   : > { %v1253_v12 = vadd.f32 %v1251_v55, %v1234_v11 }
 0x271   : > { %v1272_v14 = vadd.f32 %v1270_v60, %v1253_v12 }
 0x273   : > { %v1291_v16 = vadd.f32 %v1289_v0, %v1272_v14 }
 0x275   : > { %v1310_v17 = vadd.f32 %v1308_v7, %v1291_v16 }
 0x277   : > { %v1329_v18 = vadd.f32 %v1327_v15, %v1310_v17 }
 0x279   : > { %v1348_v20 = vadd.f32 %v1346_v19, %v1329_v18 }
 0x27b   : > { %vm1349_vm15 = vcmp.eq.f32.partialorder %v1348_v20, 8.0 }
 0x27c   : > { %v1354_v21 = vsel %vm1349_vm15, %v1352_v49, 0.0  ;;  %vm1045_vm15 = vcmp.eq.f32.partialorder %v4134_v50, inf }
 0x27d   : > { %1356 = vrot.lane.b32.xlu0 %v1354_v21, %s3848_s8  ;;  %s4771_s8 = sld [smem:[#allocation11_spill]] }
 0x29c   : > { %1058 = vadd.xlane.f32.xlu0 %v1057_v24 }
 0x2a0   : > { %1022 = vadd.xlane.f32.xlu0 %v1021_v26 }
 0x2a6   : > { %v830_v27 = vpop.xlane.xlu0 %829 }
 0x2a7   : > { %3766 = vlog2.f32 %v830_v27 }
 0x2a8   : > { %3768 = vrcp.f32 %v830_v27 }
 0x2ad   : > { %v795_v28 = vpop.xlane.xlu1 %794 }
 0x2ae   : > { %v4293_v30 = vmul.f32 0.0625, %v795_v28 }
 0x2b0   : > { %v798_v37 = vsub.f32 %v4026_v13, %v4293_v30  ;;  %v1012_v13 = vmul.f32 %v4062_v29, %v4119_v41 }
 0x2b1   : > { %v3767_v35 = vpop.eup %3766  ;;  %v1039_v0 = vpop.xlane.xlu1 %1038 }
 0x2b2   : > { %v799_v31 = vmul.f32 %v798_v37, %v798_v37  ;;  %v834_v42 = vmul.f32 0.6931472, %v3767_v35  ;;  %v3769_v45 = vpop.eup %3768  ;;  %v1013_v54 = vsel %vm4756_vm1, %v1012_v13, 0.0  ;;  %vm1378_vm1 = vcmask 56320  }
 0x2b3   : > { %v832_v48 = vmul.f32 %v3769_v45, %v4270_v40 }
 0x2b4   : > { %v800_v34 = vsel %vm4750_vm6, %v799_v31, 0.0  ;;  %v841_v44 = vmul.f32 %v799_v31, %v799_v31  ;;  %v835_v46 = vsub.f32 %v4267_v38, %v834_v42  ;;  %v850_v51 = vmul.f32 %v799_v31, %v798_v37  ;;  %v4317_v38 = vpop.xlane.xlu0 %1009 }
 0x2b5   : > { %801 = vadd.xlane.f32.xlu1 %v800_v34  ;;  %3770 = vrcp.f32 %v4317_v38 }
 0x2b6   : > { %1363 = vrot.lane.b32.xlu0 %v778_v33, %s4737_s24  ;;  %v842_v47 = vsel %vm4753_vm7, %v841_v44, 0.0  ;;  %v836_v49 = vmul.f32 %v835_v46, %v832_v48  ;;  %v851_v53 = vsel %vm4755_vm8, %v850_v51, 0.0  ;;  %vm1372_vm7 = vcmask 31744  }
 0x2b7   : > { %vm1376_vm8 = vcmask 48128  }
 0x2b8   : > { %v837_v52 = vsel %vm4754_vm10, %v836_v49, 0.0  ;;  %v1028_v55 = vpop.xlane.xlu0 %1027  ;;  %vm1374_vm10 = vcmask 39936  }
 0x2b9   : > { %814 = vadd.xlane.f32.xlu1 %v813_v39 }
 0x2bd   : > { %791 = vmin.xlane.f32.xlu1 %v790_v43 }
 0x2bf   : > { %v4321_v57 = vpop.eup %3770 }
 0x2c0   : > { %v1029_v58 = vmul.f32 %v4321_v57, %v1028_v55 }
 0x2c1   : > { %843 = vadd.xlane.f32.xlu1 %v842_v47 }
 0x2c2   : > { %3772 = vrsqrt.f32 %v1029_v58  ;;  %vm1032_vm9 = vcmp.eq.f32.partialorder %v1029_v58, inf  ;;  %v1035_v61 = vand.u32 2147483648, %v1029_v58  ;;  %vm1034_vm14 = vcmp.eq.f32.partialorder %v1029_v58, 0.0 }
 0x2c3   : > { %3774 = vrsqrt.f32 %v4134_v50 }
 0x2c5   : > { %838 = vadd.xlane.f32.xlu1 %v837_v52 }
 0x2c9   : > { %852 = vadd.xlane.f32.xlu1 %v851_v53 }
 0x2cc   : > { %v3773_v29 = vpop.eup %3772 }
 0x2cd   : > { %1014 = vadd.xlane.f32.xlu1 %v1013_v54  ;;  %v1031_v41 = vmul.f32 %v3773_v29, %v1029_v58  ;;  %v3775_v59 = vpop.eup %3774 }
 0x2ce   : > { %v1044_v62 = vmul.f32 %v3775_v59, %v4134_v50 }
 0x2cf   : > { %v1033_v60 = vsel %vm1032_vm9, %v1029_v58, %v1031_v41  ;;  %vm1382_vm9 = vcmask 72704  }
 0x2d0   : > { %v1036_v63 = vsel %vm1034_vm14, %v1035_v61, %v1033_v60  ;;  %v1046_v1 = vsel %vm1045_vm15, %v4134_v50, %v1044_v62  ;;  %vm1384_vm14 = vcmask 80896   ;;  %vm1388_vm15 = vcmask 97280  }
 0x2d1   : > { %v1396_v2 = vsel %vm1366_vm13, %v1036_v63, %v1039_v0  ;;  %v1049_v6 = vsel %vm1047_vm3, %v1048_v3, %v1046_v1  ;;  %vm1392_vm3 = vcmask 113664   ;;  %v1404_v0 = vld [vmem:[%s4758_s5] sm:$0xff] }
 0x2d2   : > { %v1397_v8 = vsel %vm1368_vm12, %v1396_v2, %v1049_v6 }
 0x2ef   : > { %v1357_v56 = vpop.permute.xlu0 %1356 }
 0x2f0   : > { %v1359_v40 = vsel %vm4757_vm11, %v1357_v56, 0.0  ;;  %vm1380_vm11 = vcmask 64512  }
 0x2f1   : > { %1360 = vadd.xlane.f32.xlu1 %v1359_v40 }
 0x329   : > { %v1059_v7 = vpop.xlane.xlu0 %1058 }
 0x32a   : > { %v1398_v11 = vsel %vm1370_vm4, %v1397_v8, %v1059_v7 }
 0x32b   : > { %1400 = vrot.lane.b32.xlu1 %v1398_v11, %s3841_s2 }
 0x32d   : > { %v1023_v42 = vpop.xlane.xlu0 %1022 }
 0x32e   : > { %v1024_v61 = vmul.f32 %v4321_v57, %v1023_v42 }
 0x331   : > { %v1364_v47 = vpop.permute.xlu0 %1363 }
 0x342   : > { %v802_v12 = vpop.xlane.xlu1 %801 }
 0x343   : > { %v803_v15 = vmul.f32 0.06666667, %v802_v12 }
 0x345   : > { %3776 = vrsqrt.f32 %v803_v15  ;;  %vm806_vm2 = vcmp.eq.f32.partialorder %v803_v15, inf  ;;  %v809_v20 = vand.u32 2147483648, %v803_v15  ;;  %vm808_vm5 = vcmp.eq.f32.partialorder %v803_v15, 0.0 }
 0x346   : > { %v815_v14 = vpop.xlane.xlu1 %814 }
 0x347   : > { %v816_v16 = vmul.f32 0.0625, %v815_v14 }
 0x349   : > { %3778 = vrsqrt.f32 %v816_v16  ;;  %vm819_vm6 = vcmp.eq.f32.partialorder %v816_v16, inf  ;;  %v822_v22 = vand.u32 2147483648, %v816_v16  ;;  %vm821_vm0 = vcmp.eq.f32.partialorder %v816_v16, 0.0 }
 0x34a   : > { %v792_v24 = vpop.xlane.xlu1 %791 }
 0x34b   : > { %v1367_v27 = vsel %vm1366_vm13, %v4263_v36, %v792_v24  ;;  %v824_v33 = vsub.f32 %v4263_v36, %v792_v24  ;;  %vm1386_vm13 = vcmask 89088  }
 0x34e   : > { %v844_v31 = vpop.xlane.xlu1 %843 }
 0x34f   : > { %v3777_v17 = vpop.eup %3776  ;;  %v845_v44 = vmul.f32 0.0625, %v844_v31 }
 0x350   : > { %v805_v19 = vmul.f32 %v3777_v17, %v803_v15  ;;  %v846_v34 = vmul.f32 %v3777_v17, %v3777_v17 }
 0x352   : > { %v807_v21 = vsel %vm806_vm2, %v803_v15, %v805_v19  ;;  %v839_v39 = vpop.xlane.xlu1 %838  ;;  %v847_v43 = vmul.f32 %v846_v34, %v846_v34  ;;  %v855_v52 = vmul.f32 %v3777_v17, %v846_v34  ;;  %vm4759_vm2 = vcmask 130048  }
 0x353   : > { %v3779_v18 = vpop.eup %3778  ;;  %v810_v25 = vsel %vm808_vm5, %v809_v20, %v807_v21  ;;  %v840_v46 = vsub.f32 0.0, %v839_v39  ;;  %vm1551_vm5 = vcmask 162816   ;;  %v1408_v39 = vld [vmem:[%s4762_s29 + $0x8] sm:$0xff] }
 0x354   : > { %v818_v50 = vmul.f32 %v3779_v18, %v816_v16  ;;  %v1369_v28 = vsel %vm1368_vm12, %v1367_v27, %v810_v25  ;;  %v848_v49 = vmul.f32 %v847_v43, %v845_v44  ;;  %vm1390_vm12 = vcmask 105472  }
 0x356   : > { %v820_v23 = vsel %vm819_vm6, %v816_v16, %v818_v50  ;;  %v853_v51 = vpop.xlane.xlu1 %852  ;;  %v3183_v53 = vadd.f32 -3.0, %v848_v49  ;;  %vm4760_vm6 = vmmov 0  }
 0x357   : > { %v823_v26 = vsel %vm821_vm0, %v822_v22, %v820_v23  ;;  %v854_v36 = vmul.f32 0.0625, %v853_v51  ;;  %vm1554_vm0 = vcmask 326656   ;;  %v1450_v23 = vshrl.u32 %v779_v4, 7 }
 0x358   : > { %v1371_v37 = vsel %vm1370_vm4, %v1369_v28, %v823_v26  ;;  %vm1394_vm4 = vcmask 121856  }
 0x359   : > { %v1373_v32 = vsel %vm1372_vm7, %v1371_v37, %v4293_v30  ;;  %v856_v54 = vmul.f32 %v855_v52, %v854_v36  ;;  %vm1455_vm7 = vcmp.eq.s32.totalorder %v1450_v23, %v4010_v10  ;;  %v1451_v25 = vadd.s32 8, %v1450_v23 }
 0x35a   : > { %v1375_v35 = vsel %vm1374_vm10, %v1373_v32, %v824_v33  ;;  %v1015_v55 = vpop.xlane.xlu1 %1014  ;;  %v3202_v27 = vsel %vm1455_vm7, 1.0, %v3830_v9  ;;  %v1452_v28 = vadd.s32 16, %v1450_v23  ;;  %v1453_v37 = vadd.s32 24, %v1450_v23 }
 0x35b   : > { %v1377_v45 = vsel %vm1376_vm8, %v1375_v35, %v803_v15  ;;  %v1016_v58 = vmul.f32 %v4321_v57, %v1015_v55  ;;  %vm1456_vm10 = vcmp.eq.s32.totalorder %v1451_v25, %v4010_v10  ;;  %v1454_v32 = vadd.s32 32, %v1450_v23  ;;  %v1405_v35 = vld [vmem:[%s4761_s28] sm:$0xff]  ;;  %s776_s28 = scalar_lea.vmem %s4708_s25, %s4775_s30 }
 0x35c   : > { %v1379_v48 = vsel %vm1378_vm1, %v1377_v45, %v840_v46  ;;  %v3203_v4 = vsel %vm1456_vm10, 1.0, %v3830_v9  ;;  %vm1457_vm8 = vcmp.eq.s32.totalorder %v1452_v28, %v4010_v10  ;;  %vm1458_vm1 = vcmp.eq.s32.totalorder %v1453_v37, %v4010_v10  ;;  %v1419_v25 = vld [vmem:[%s4696_s13] sm:$0xff] }
 0x35d   : > { %v1381_v30 = vsel %vm1380_vm11, %v1379_v48, %v1364_v47  ;;  %v3204_v31 = vsel %vm1457_vm8, 1.0, %v3830_v9  ;;  %v3205_v33 = vsel %vm1458_vm1, 1.0, %v3830_v9  ;;  %vm2906_vm1 = vcmask 392192  }
 0x35e   : > { %v1383_v13 = vsel %vm1382_vm9, %v1381_v30, %v1364_v47  ;;  %vm1459_vm9 = vcmp.eq.s32.totalorder %v1454_v32, %v4010_v10  ;;  %v1407_v10 = vld [vmem:[%s4762_s29] sm:$0xff] }
 0x35f   : > { %v1385_v56 = vsel %vm1384_vm14, %v1383_v13, %v3183_v53  ;;  %v3206_v34 = vsel %vm1459_vm9, 1.0, %v3830_v9  ;;  %v3651_v42 = vpack.c.bf16 %v1408_v39, %v1407_v10  ;;  %vm4765_vm14 = vmmov %vm4759_vm2  ;;  %vm3114_vm9 = vcmask 0  }
 0x360   : > { %v1387_v40 = vsel %vm1386_vm13, %v1385_v56, %v856_v54  ;;  %vm4766_vm13 = vmmov %vm4759_vm2 }
 0x361   : > { %v1389_v41 = vsel %vm1388_vm15, %v1387_v40, %v1016_v58  ;;  %vm4767_vm15 = vmmov %vm4759_vm2 }
 0x37e   : > { %v1361_v29 = vpop.xlane.xlu1 %1360 }
 0x37f   : > { %v1391_v59 = vsel %vm1390_vm12, %v1389_v41, %v1361_v29  ;;  %v1416_v41 = vld [vmem:[%s4694_s11] sm:$0xff]  ;;  %vm4768_vm12 = vmmov %vm4759_vm2 }
 0x380   : > { %v1393_v60 = vsel %vm1392_vm3, %v1391_v59, %v4317_v38  ;;  %v1417_v59 = vld [vmem:[%s4694_s11 + $0x8] sm:$0xff]  ;;  %vm4769_vm3 = vmmov %vm4759_vm2 }
 0x381   : > { %v1395_v62 = vsel %vm1394_vm4, %v1393_v60, %v1024_v61  ;;  %v3660_v60 = vpack.c.bf16 %v1417_v59, %v1416_v41  ;;  %v3214_v61 = vld [vmem:[%s4764_s9] ss:$0 sm:$0xff]  ;;  %vm4770_vm4 = vmmov %vm4759_vm2 }
 0x39d   : > { %v1401_v63 = vpop.permute.xlu1 %1400 }
 0x39e   : > { %v1403_v1 = vsel %vm4759_vm2, %v1395_v62, %v1401_v63  ;;  %vm2453_vm2 = vcmask 261120  }
 0x39f   : > { %3414 = vmatpush3.msra.mxu0 %v1403_v1  ;;  %vm4609_vm8 = vmpackc.low %vm2453_vm2, %vm2453_vm2 }
 0x3a0   : > { %3416 = vmatmul.mubr.msk.f32.vlgmr.msra.gmra.mrb[2].mxu0 %vm1380_vm11, %v1404_v0  ;;  %3435 = vmatprep.subr.mxu0 %v3830_v9 }
 0x3a1   : > { %3437 = vmatprep.mubr.msk.f32.mxu0 %vm4760_vm6, %v3830_v9  ;;  %3436 = vmatpush3.msra.mxu0 %v1405_v35 }
 0x3a2   : > { %3653 = vmatprep.subr.bf16.mxu0 %v3828_v5 }
 0x473   : > { %v1539_v38 = vpop.f32.mrb[2].mxu0 }
 0x474   : > { %v1543_v2 = vand.u32 2147483647, %v1539_v38  ;;  %v3417_v3 = vpop.f32.mrb[3].mxu0 }
 0x476   : > { %v1544_v57 = vmax.f32 %v1543_v2, 1e-12 }
 0x478   : > { %3780 = vrsqrt.f32 %v1544_v57 }
 0x482   : > { %v3781_v6 = vpop.eup %3780 }
 0x483   : > { %v1546_v7 = vmul.f32 %v3781_v6, %v1539_v38 }
 0x485   : > { %1548 = vrot.lane.b32.xlu1 %v1546_v7, %s3849_s3 }
 0x4f7   : > { %v1549_v8 = vpop.permute.xlu1 %1548 }
 0x4f8   : > { %v1552_v11 = vsel %vm1551_vm5, %v1403_v1, %v1549_v8 }
 0x4f9   : > { %v1553_v12 = vmul.f32 %v1552_v11, %v1552_v11 }
 0x4fb   : > { %v1555_v14 = vsel %vm1554_vm0, %v1553_v12, 0.0 }
 0x4fc   : > { %1556 = vadd.xlane.f32.xlu1 %v1555_v14 }
 0x589   : > { %v1557_v15 = vpop.xlane.xlu1 %1556 }
 0x58a   : > { %v1558_v16 = vrot.slane %v1557_v15, 4 }
 0x58c   : > { %v1559_v17 = vadd.f32 %v1558_v16, %v1557_v15 }
 0x58e   : > { %v1560_v18 = vrot.slane %v1559_v17, 2 }
 0x590   : > { %v1561_v19 = vadd.f32 %v1560_v18, %v1559_v17  ;;  %v3226_v18 = vld [vmem:[%s4693_s10] ss:$0 sm:$0xff] }
 0x592   : > { %v1562_v50 = vrot.slane %v1561_v19, 1 }
 0x594   : > { %v1563_v20 = vadd.f32 %v1562_v50, %v1561_v19 }
 0x596   : > { %3728 = vpush %v1563_v20 }
 0x5c7   : > { %s3729_s24 = spop %3728 }
 0x5c8   : > { %v1565_v21 = vstv %s3729_s24  ;;  %s4763_s24 = sld [smem:[#allocation12_spill]] }
 0x5c9   : > { %3782 = vrsqrt.f32 %v1565_v21 }
 0x5ce   : > { %v1410_v43 = vld [vmem:[%s4763_s24] sm:$0xff]  ;;  %v1411_v44 = vld [vmem:[%s4763_s24 + $0x8] sm:$0xff]  ;;  %v1412_v46 = vld [vmem:[%s4763_s24 + $0x10] sm:$0xff] }
 0x5cf   : > { %v3654_v45 = vpack.c.bf16 %v1411_v44, %v1410_v43  ;;  %v1413_v47 = vld [vmem:[%s4763_s24 + $0x18] sm:$0xff]  ;;  %v1414_v53 = vld [vmem:[%s4763_s24 + $0x20] sm:$0xff] }
 0x5d0   : > { %v3657_v51 = vpack.c.bf16 %v1413_v47, %v1412_v46  ;;  %v3228_v46 = vld [vmem:[%s4695_s12] ss:$0 sm:$0xff] }
 0x5d3   : > { %v3783_v22 = vpop.eup %3782 }
 0x5d4   : > { %3730 = vpush %v3783_v22 }
 0x605   : > { %s3731_s1 = spop %3730 }
 0x606   : > { %v1568_v24 = vstv %s3731_s1 }
 0x607   : > { %v4355_v26 = vmul.f32 %v1568_v24, %v1552_v11 }
 0x609   : > { %3419 = vmatpush3.xpose.msk.msra.mxu1 %vm1554_vm0, %v4355_v26 }
 0x60a   : > { %3650 = vmatprep.subr.bf16.mxu1 %v3828_v5 }
 0x60c   : > { %3421 = vmatmul.mubr.msk.f32.vlgmr.msra.gmra.mrb[2].mxu1 %vm1554_vm0, %v3202_v27  ;;  %v3220_v27 = vld [vmem:[%s4771_s8] ss:$0 sm:$0xff] }
 0x60d   : > { %3423 = vmatprep.mubr.msk.f32.mxu1 %vm4760_vm6, %v3830_v9  ;;  %3652 = vmatpush3.bf16.msra.mxu1 %v3651_v42 }
 0x60e   : > { %3516 = vmatprep.subr.mxu1 %v3830_v9 }
 0x610   : > { %3424 = vmatmul.mubr.msk.f32.gmra.mrb[4].mxu1 %vm1554_vm0, %v3203_v4 }
 0x611   : > { %3426 = vmatprep.mubr.msk.f32.mxu1 %vm4760_vm6, %v3830_v9 }
 0x614   : > { %3427 = vmatmul.mubr.msk.f32.gmra.mrb[6].mxu1 %vm1554_vm0, %v3204_v31 }
 0x615   : > { %3429 = vmatprep.mubr.msk.f32.mxu1 %vm4760_vm6, %v3830_v9 }
 0x618   : > { %3430 = vmatmul.mubr.msk.f32.gmra.mrb[8].mxu1 %vm1554_vm0, %v3205_v33 }
 0x619   : > { %3432 = vmatprep.mubr.msk.f32.mxu1 %vm4760_vm6, %v3830_v9 }
 0x61c   : > { %3433 = vmatmul.mubr.msk.f32.gmra.mrb[10].mxu1 %vm1554_vm0, %v3206_v34 }
 0x61d   : > { %3456 = vmatprep.mubr.msk.f32.mxu1 %vm4760_vm6, %v3830_v9 }
 0x6df   : > { %v4407_v48 = vpop.f32.mrb[2].mxu1 }
 0x6e0   : > { %3438 = vmatmul.mubr.msk.f32.vlgmr.msra.gmra.mrb[4].mxu0 %vm1380_vm11, %v4407_v48  ;;  %v3422_v49 = vpop.f32.mrb[3].mxu1 }
 0x6e1   : > { %3440 = vmatprep.mubr.msk.f32.mxu0 %vm4760_vm6, %v3830_v9  ;;  %3655 = vmatpush3.bf16.msra.mxu0 %v3654_v45 }
 0x6e2   : > { %3656 = vmatprep.subr.bf16.mxu0 %v3828_v5 }
 0x6e3   : > { %v4414_v30 = vpop.f32.mrb[4].mxu1 }
 0x6e4   : > { %v3663_v52 = vpack.c.bf16 %v4414_v30, %v4407_v48  ;;  %3441 = vmatmul.mubr.msk.f32.gmra.mrb[6].mxu0 %vm1380_vm11, %v4414_v30  ;;  %v3425_v36 = vpop.f32.mrb[5].mxu1  ;;  %v1422_v30 = vld [vmem:[%s4698_s15 + $0x8] sm:$0xff] }
 0x6e5   : > { %3443 = vmatprep.mubr.msk.f32.mxu0 %vm4760_vm6, %v3830_v9  ;;  %3658 = vmatpush3.bf16.msra.mxu0 %v3657_v51  ;;  %v1421_v51 = vld [vmem:[%s4698_s15] sm:$0xff]  ;;  %v1423_v36 = vld [vmem:[%s4698_s15 + $0x10] sm:$0xff] }
 0x6e6   : > { %3479 = vmatprep.subr.mxu0 %v3830_v9 }
 0x6e7   : > { %v4426_v13 = vpop.f32.mrb[6].mxu1 }
 0x6e8   : > { %3444 = vmatmul.mubr.msk.f32.gmra.mrb[8].mxu0 %vm1380_vm11, %v4426_v13  ;;  %v3428_v54 = vpop.f32.mrb[7].mxu1 }
 0x6e9   : > { %3446 = vmatprep.mubr.msk.f32.mxu0 %vm4760_vm6, %v3830_v9  ;;  %3480 = vmatpush3.msra.mxu0 %v1414_v53  ;;  %v1424_v53 = vld [vmem:[%s4698_s15 + $0x18] sm:$0xff] }
 0x6ea   : > { %3659 = vmatprep.subr.bf16.mxu0 %v3828_v5 }
 0x6eb   : > { %v1669_v55 = vpop.f32.mrb[8].mxu1 }
 0x6ec   : > { %v3666_v56 = vpack.c.bf16 %v1669_v55, %v4426_v13  ;;  %3447 = vmatmul.mubr.msk.f32.gmra.mrb[10].mxu0 %vm1380_vm11, %v1669_v55  ;;  %v3431_v40 = vpop.f32.mrb[9].mxu1  ;;  %v3672_v55 = vpack.c.bf16 %v1424_v53, %v1423_v36 }
 0x6ed   : > { %3449 = vmatprep.mubr.msk.f32.mxu0 %vm4760_vm6, %v3830_v9 }
 0x6ef   : > { %v1674_v58 = vpop.f32.mrb[10].mxu1 }
 0x6f0   : > { %3450 = vmatmul.mubr.msk.f32.gmra.mrb[12].mxu0 %vm1380_vm11, %v1674_v58  ;;  %v3434_v29 = vpop.f32.mrb[11].mxu1 }
 0x6f1   : > { %3481 = vmatprep.mubr.msk.f32.mxu0 %vm4760_vm6, %v3830_v9 }
 0x6f4   : > { %3482 = vmatmul.mubr.msk.f32.vlgmr.msra.gmra.mrb[14].mxu0 %vm1554_vm0, %v4355_v26 }
 0x6f5   : > { %3488 = vmatprep.mubr.msk.f32.mxu0 %vm4760_vm6, %v3830_v9  ;;  %3661 = vmatpush3.bf16.msra.mxu0 %v3660_v60 }
 0x6f6   : > { %3662 = vmatprep.subr.bf16.mxu0 %v3828_v5 }
 0x7b3   : > { %v1765_v62 = vpop.f32.mrb[4].mxu0 }
 0x7b4   : > { %v1766_v63 = vadd.f32 %v3214_v61, %v1765_v62  ;;  %v3439_v0 = vpop.f32.mrb[5].mxu0 }
 0x7b5   : > { %v1427_v0 = vld [vmem:[%s4700_s17] sm:$0xff] }
 0x7b6   : > { %3784 = vtanh.f32 %v1766_v63 }
 0x7b7   : > { %v1770_v1 = vpop.f32.mrb[6].mxu0 }
 0x7b8   : > { %v1771_v38 = vadd.f32 %v3214_v61, %v1770_v1  ;;  %v3442_v2 = vpop.f32.mrb[7].mxu0  ;;  %v1428_v1 = vld [vmem:[%s4700_s17 + $0x8] sm:$0xff] }
 0x7b9   : > { %v3674_v2 = vpack.c.bf16 %v1428_v1, %v1427_v0 }
 0x7ba   : > { %3786 = vtanh.f32 %v1771_v38  ;;  %v1432_v38 = vld [vmem:[%s4702_s19] sm:$0xff] }
 0x7bb   : > { %v1775_v3 = vpop.f32.mrb[8].mxu0 }
 0x7bc   : > { %v1776_v57 = vadd.f32 %v3214_v61, %v1775_v3  ;;  %v3445_v6 = vpop.f32.mrb[9].mxu0 }
 0x7bd   : > { %v1430_v6 = vld [vmem:[%s4700_s17 + $0x18] sm:$0xff] }
 0x7be   : > { %3788 = vtanh.f32 %v1776_v57  ;;  %v1429_v57 = vld [vmem:[%s4700_s17 + $0x10] sm:$0xff] }
 0x7bf   : > { %v1780_v7 = vpop.f32.mrb[10].mxu0 }
 0x7c0   : > { %v3785_v8 = vpop.eup %3784  ;;  %v1781_v11 = vadd.f32 %v3214_v61, %v1780_v7  ;;  %v3448_v12 = vpop.f32.mrb[11].mxu0  ;;  %v1434_v7 = vld [vmem:[%s4702_s19 + $0x10] sm:$0xff] }
 0x7c1   : > { %3457 = vmatmul.mubr.msk.f32.vlgmr.msra.gmra.mrb[12].mxu1 %vm4765_vm14, %v3785_v8  ;;  %v3678_v8 = vpack.c.bf16 %v1430_v6, %v1429_v57 }
 0x7c2   : > { %3790 = vtanh.f32 %v1781_v11  ;;  %3459 = vmatprep.mubr.msk.f32.mxu1 %vm4760_vm6, %v3830_v9  ;;  %3517 = vmatpush3.msra.mxu1 %v1419_v25  ;;  %v1435_v11 = vld [vmem:[%s4702_s19 + $0x18] sm:$0xff]  ;;  %v1439_v25 = vld [vmem:[%s4704_s21 + $0x10] sm:$0xff] }
 0x7c3   : > { %v1785_v14 = vpop.f32.mrb[12].mxu0  ;;  %3668 = vmatprep.subr.bf16.mxu1 %v3828_v5  ;;  %v3686_v12 = vpack.c.bf16 %v1435_v11, %v1434_v7  ;;  %v3258_v11 = vld [vmem:[%s4705_s22] ss:$0 sm:$0xff] }
 0x7c4   : > { %v3787_v15 = vpop.eup %3786  ;;  %v1786_v16 = vadd.f32 %v3214_v61, %v1785_v14  ;;  %v3451_v17 = vpop.f32.mrb[13].mxu0  ;;  %v1437_v14 = vld [vmem:[%s4704_s21] sm:$0xff] }
 0x7c5   : > { %3460 = vmatmul.mubr.msk.f32.gmra.mrb[14].mxu1 %vm4766_vm13, %v3787_v15  ;;  %v1438_v15 = vld [vmem:[%s4704_s21 + $0x8] sm:$0xff]  ;;  %v3235_v17 = vld [vmem:[%s4697_s14] ss:$0 sm:$0xff] }
 0x7c6   : > { %3792 = vtanh.f32 %v1786_v16  ;;  %3462 = vmatprep.mubr.msk.f32.mxu1 %vm4760_vm6, %v3830_v9  ;;  %v3690_v16 = vpack.c.bf16 %v1438_v15, %v1437_v14 }
 0x7c7   : > { %v1977_v19 = vpop.f32.mrb[14].mxu0 }
 0x7c8   : > { %v3789_v50 = vpop.eup %3788  ;;  %v1978_v20 = vadd.f32 %v3226_v18, %v1977_v19  ;;  %v3483_v21 = vpop.f32.mrb[15].mxu0 }
 0x7c9   : > { %3463 = vmatmul.mubr.msk.f32.gmra.mrb[16].mxu1 %vm4767_vm15, %v3789_v50 }
 0x7ca   : > { %3794 = vtanh.f32 %v1978_v20  ;;  %3465 = vmatprep.mubr.msk.f32.mxu1 %vm4760_vm6, %v3830_v9 }
 0x7cc   : > { %v3791_v22 = vpop.eup %3790 }
 0x7cd   : > { %3466 = vmatmul.mubr.msk.f32.gmra.mrb[18].mxu1 %vm4768_vm12, %v3791_v22 }
 0x7ce   : > { %3468 = vmatprep.mubr.msk.f32.mxu1 %vm4760_vm6, %v3830_v9 }
 0x7d0   : > { %v3793_v23 = vpop.eup %3792 }
 0x7d1   : > { %3469 = vmatmul.mubr.msk.f32.gmra.mrb[20].mxu1 %vm4769_vm3, %v3793_v23 }
 0x7d2   : > { %3518 = vmatprep.mubr.msk.f32.mxu1 %vm4760_vm6, %v3830_v9 }
 0x7d4   : > { %v3795_v24 = vpop.eup %3794 }
 0x7d5   : > { %3489 = vmatmul.mubr.msk.f32.vlgmr.msra.gmra.mrb[16].mxu0 %vm4770_vm4, %v3795_v24 }
 0x7d6   : > { %3664 = vmatpush3.bf16.msra.mxu0 %v3663_v52  ;;  %3501 = vmatprep.mubr.msk.f32.mxu0 %vm4760_vm6, %v3830_v9  ;;  %v3669_v52 = vpack.c.bf16 %v1422_v30, %v1421_v51 }
 0x7d7   : > { %3665 = vmatprep.subr.bf16.mxu0 %v3828_v5 }
 0x7da   : > { %3667 = vmatpush3.bf16.msra.mxu0 %v3666_v56 }
 0x7db   : > { %3499 = vmatprep.subr.mxu0 %v3830_v9 }
 0x7de   : > { %3500 = vmatpush3.msra.mxu0 %v1674_v58  ;;  %v1425_v58 = vld [vmem:[%s4698_s15 + $0x20] sm:$0xff] }
 0x7df   : > { %3533 = vmatprep.subr.mxu0 %v3830_v9 }
 0x894   : > { %v1881_v28 = vpop.f32.mrb[12].mxu1 }
 0x895   : > { %v1882_v4 = vadd.f32 %v3220_v27, %v1881_v28  ;;  %v3458_v37 = vpop.f32.mrb[13].mxu1 }
 0x897   : > { %3502 = vmatmul.mubr.msk.f32.vlgmr.msra.gmra.mrb[18].mxu0 %vm1554_vm0, %v1882_v4 }
 0x898   : > { %3534 = vmatpush3.msra.mxu0 %v4355_v26  ;;  %v1886_v31 = vpop.f32.mrb[14].mxu1  ;;  %3504 = vmatprep.mubr.msk.f32.mxu0 %vm4760_vm6, %v3830_v9 }
 0x899   : > { %v1887_v32 = vadd.f32 %v3220_v27, %v1886_v31  ;;  %v3461_v33 = vpop.f32.mrb[15].mxu1  ;;  %3675 = vmatprep.subr.bf16.mxu0 %v3674_v2 }
 0x89b   : > { %3505 = vmatmul.mubr.msk.f32.gmra.mrb[20].mxu0 %vm1554_vm0, %v1887_v32 }
 0x89c   : > { %v1891_v34 = vpop.f32.mrb[16].mxu1  ;;  %3507 = vmatprep.mubr.msk.f32.mxu0 %vm4760_vm6, %v3830_v9 }
 0x89d   : > { %v1892_v35 = vadd.f32 %v3220_v27, %v1891_v34  ;;  %v3464_v10 = vpop.f32.mrb[17].mxu1 }
 0x89f   : > { %3508 = vmatmul.mubr.msk.f32.gmra.mrb[22].mxu0 %vm1554_vm0, %v1892_v35 }
 0x8a0   : > { %v1896_v39 = vpop.f32.mrb[18].mxu1  ;;  %3510 = vmatprep.mubr.msk.f32.mxu0 %vm4760_vm6, %v3830_v9 }
 0x8a1   : > { %v1897_v26 = vadd.f32 %v3220_v27, %v1896_v39  ;;  %v3467_v42 = vpop.f32.mrb[19].mxu1 }
 0x8a3   : > { %3511 = vmatmul.mubr.msk.f32.gmra.mrb[24].mxu0 %vm1554_vm0, %v1897_v26 }
 0x8a4   : > { %v1901_v43 = vpop.f32.mrb[20].mxu1  ;;  %3513 = vmatprep.mubr.msk.f32.mxu0 %vm4760_vm6, %v3830_v9 }
 0x8a5   : > { %v1902_v44 = vadd.f32 %v3220_v27, %v1901_v43  ;;  %v3470_v45 = vpop.f32.mrb[21].mxu1  ;;  %v1440_v27 = vld [vmem:[%s4704_s21 + $0x18] sm:$0xff] }
 0x8a6   : > { %v3694_v37 = vpack.c.bf16 %v1440_v27, %v1439_v25 }
 0x8a7   : > { %3514 = vmatmul.mubr.msk.f32.gmra.mrb[26].mxu0 %vm1554_vm0, %v1902_v44 }
 0x8a8   : > { %v2057_v47 = vpop.f32.mrb[16].mxu0  ;;  %3535 = vmatprep.mubr.msk.f32.mxu0 %vm4760_vm6, %v3830_v9 }
 0x8a9   : > { %v2058_v48 = vadd.f32 %v3228_v46, %v2057_v47  ;;  %v3490_v49 = vpop.f32.mrb[17].mxu0  ;;  %v3242_v47 = vld [vmem:[%s4699_s16] ss:$0 sm:$0xff] }
 0x8ab   : > { %3536 = vmatmul.mubr.msk.f32.vlgmr.msra.gmra.mrb[28].mxu0 %vm1380_vm11, %v2058_v48 }
 0x8ac   : > { %3677 = vmatpush3.bf16.msra.mxu0 %v3674_v2 }
 0x8ad   : > { %3679 = vmatprep.subr.bf16.mxu0 %v3678_v8 }
 0x8b0   : > { %3681 = vmatpush3.bf16.msra.mxu0 %v3678_v8 }
 0x8b1   : > { %3691 = vmatprep.subr.bf16.mxu0 %v3690_v16 }
 0x96a   : > { %v2142_v13 = vpop.f32.mrb[18].mxu0 }
 0x96b   : > { %3519 = vmatmul.mubr.msk.f32.vlgmr.msra.gmra.mrb[22].mxu1 %vm1380_vm11, %v2142_v13  ;;  %v3503_v54 = vpop.f32.mrb[19].mxu0  ;;  %v3251_v13 = vld [vmem:[%s4703_s20] ss:$0 sm:$0xff] }
 0x96c   : > { %3521 = vmatprep.mubr.msk.f32.mxu1 %vm4760_vm6, %v3830_v9  ;;  %3670 = vmatpush3.bf16.msra.mxu1 %v3669_v52  ;;  %v3244_v54 = vld [vmem:[%s4701_s18] ss:$0 sm:$0xff] }
 0x96d   : > { %3671 = vmatprep.subr.bf16.mxu1 %v3828_v5 }
 0x96e   : > { %v2147_v56 = vpop.f32.mrb[20].mxu0 }
 0x96f   : > { %3522 = vmatmul.mubr.msk.f32.gmra.mrb[24].mxu1 %vm1380_vm11, %v2147_v56  ;;  %v3506_v40 = vpop.f32.mrb[21].mxu0 }
 0x970   : > { %3524 = vmatprep.mubr.msk.f32.mxu1 %vm4760_vm6, %v3830_v9  ;;  %3673 = vmatpush3.bf16.msra.mxu1 %v3672_v55 }
 0x971   : > { %3546 = vmatprep.subr.mxu1 %v3830_v9 }
 0x972   : > { %v2152_v29 = vpop.f32.mrb[22].mxu0 }
 0x973   : > { %3525 = vmatmul.mubr.msk.f32.gmra.mrb[26].mxu1 %vm1380_vm11, %v2152_v29  ;;  %v3509_v41 = vpop.f32.mrb[23].mxu0 }
 0x974   : > { %3527 = vmatprep.mubr.msk.f32.mxu1 %vm4760_vm6, %v3830_v9  ;;  %3547 = vmatpush3.msra.mxu1 %v1425_v58 }
 0x976   : > { %v2157_v5 = vpop.f32.mrb[24].mxu0 }
 0x977   : > { %3528 = vmatmul.mubr.msk.f32.gmra.mrb[28].mxu1 %vm1380_vm11, %v2157_v5  ;;  %v3512_v59 = vpop.f32.mrb[25].mxu0 }
 0x978   : > { %3530 = vmatprep.mubr.msk.f32.mxu1 %vm4760_vm6, %v3830_v9 }
 0x97a   : > { %v2162_v60 = vpop.f32.mrb[26].mxu0 }
 0x97b   : > { %3531 = vmatmul.mubr.msk.f32.gmra.mrb[30].mxu1 %vm1380_vm11, %v2162_v60  ;;  %v3515_v61 = vpop.f32.mrb[27].mxu0 }
 0x97c   : > { %3548 = vmatprep.mubr.msk.f32.mxu1 %vm4760_vm6, %v3830_v9  ;;  %v1433_v9 = vld [vmem:[%s4702_s19 + $0x8] sm:$0xff] }
 0x97d   : > { %v3682_v3 = vpack.c.bf16 %v1433_v9, %v1432_v38 }
 0x97e   : > { %v2361_v62 = vpop.f32.mrb[28].mxu0 }
 0x97f   : > { %v3537_v63 = vpop.f32.mrb[29].mxu0  ;;  %3549 = vmatmul.mubr.msk.f32.vlgmr.msra.gmra.mrb[32].mxu1 %vm1554_vm0, %v2361_v62  ;;  %3683 = vmatprep.subr.bf16.mxu1 %v3682_v3 }
 0x980   : > { %3685 = vmatpush3.bf16.msra.mxu1 %v3682_v3 }
 0x981   : > { %3687 = vmatprep.subr.bf16.mxu1 %v3686_v12 }
 0x984   : > { %3689 = vmatpush3.bf16.msra.mxu1 %v3686_v12 }
 0xa3e   : > { %v2253_v18 = vpop.f32.mrb[22].mxu1 }
 0xa3f   : > { %v2254_v19 = vadd.f32 %v3235_v17, %v2253_v18  ;;  %v3520_v50 = vpop.f32.mrb[23].mxu1 }
 0xa41   : > { %vm2277_vm11 = vcmp.ge.f32.partialorder %v2254_v19, 0.0  ;;  %v2282_v20 = vmul.f32 0.01, %v2254_v19 }
 0xa42   : > { %v2258_v21 = vpop.f32.mrb[24].mxu1 }
 0xa43   : > { %v2259_v22 = vadd.f32 %v3235_v17, %v2258_v21  ;;  %v3523_v23 = vpop.f32.mrb[25].mxu1  ;;  %v2287_v24 = vsel %vm2277_vm11, %v2254_v19, %v2282_v20 }
 0xa44   : > { %3559 = vmatprep.mubr.msk.f32.mxu0 %vm2453_vm2, %v2287_v24  ;;  %3576 = vmatprep.mubr.msk.f32.mxu1 %vm2453_vm2, %v2287_v24 }
 0xa45   : > { %vm2278_vm6 = vcmp.ge.f32.partialorder %v2259_v22, 0.0  ;;  %v2283_v28 = vmul.f32 0.01, %v2259_v22 }
 0xa46   : > { %v2263_v4 = vpop.f32.mrb[26].mxu1 }
 0xa47   : > { %v2288_v31 = vsel %vm2278_vm6, %v2259_v22, %v2283_v28  ;;  %v2264_v32 = vadd.f32 %v3235_v17, %v2263_v4  ;;  %v3526_v33 = vpop.f32.mrb[27].mxu1 }
 0xa48   : > { %3560 = vmatmul.mubr.msk.f32.vlgmr.msra.gmra.mrb[30].mxu0 %vm2453_vm2, %v2288_v31  ;;  %3577 = vmatmul.mubr.msk.f32.vlgmr.msra.gmra.mrb[34].mxu1 %vm2453_vm2, %v2288_v31 }
 0xa49   : > { %vm2279_vm5 = vcmp.ge.f32.partialorder %v2264_v32, 0.0  ;;  %v2284_v34 = vmul.f32 0.01, %v2264_v32  ;;  %3693 = vmatpush3.bf16.msra.mxu0 %v3690_v16 }
 0xa4a   : > { %v2268_v35 = vpop.f32.mrb[28].mxu1  ;;  %3695 = vmatprep.subr.bf16.mxu0 %v3694_v37 }
 0xa4b   : > { %v2269_v10 = vadd.f32 %v3235_v17, %v2268_v35  ;;  %v3529_v39 = vpop.f32.mrb[29].mxu1  ;;  %v2289_v26 = vsel %vm2279_vm5, %v2264_v32, %v2284_v34 }
 0xa4c   : > { %3562 = vmatprep.mubr.msk.f32.mxu0 %vm2453_vm2, %v2289_v26  ;;  %3579 = vmatprep.mubr.msk.f32.mxu1 %vm2453_vm2, %v2289_v26 }
 0xa4d   : > { %vm2280_vm0 = vcmp.ge.f32.partialorder %v2269_v10, 0.0  ;;  %v2285_v42 = vmul.f32 0.01, %v2269_v10  ;;  %3697 = vmatpush3.bf16.msra.mxu0 %v3694_v37 }
 0xa4e   : > { %v2273_v43 = vpop.f32.mrb[30].mxu1 }
 0xa4f   : > { %v2274_v44 = vadd.f32 %v3235_v17, %v2273_v43  ;;  %v2290_v45 = vsel %vm2280_vm0, %v2269_v10, %v2285_v42  ;;  %v3532_v46 = vpop.f32.mrb[31].mxu1 }
 0xa50   : > { %3563 = vmatmul.mubr.msk.f32.gmra.mrb[32].mxu0 %vm2453_vm2, %v2290_v45  ;;  %3580 = vmatmul.mubr.msk.f32.gmra.mrb[36].mxu1 %vm2453_vm2, %v2290_v45 }
 0xa51   : > { %vm2281_vm7 = vcmp.ge.f32.partialorder %v2274_v44, 0.0  ;;  %v2286_v48 = vmul.f32 0.01, %v2274_v44 }
 0xa52   : > { %v2440_v49 = vpop.f32.mrb[32].mxu1 }
 0xa53   : > { %v2441_v51 = vadd.f32 %v3242_v47, %v2440_v49  ;;  %v3550_v30 = vpop.f32.mrb[33].mxu1  ;;  %v2291_v52 = vsel %vm2281_vm7, %v2274_v44, %v2286_v48 }
 0xa54   : > { %3565 = vmatprep.mubr.msk.f32.mxu0 %vm2453_vm2, %v2291_v52  ;;  %3582 = vmatprep.mubr.msk.f32.mxu1 %vm2453_vm2, %v2291_v52 }
 0xa55   : > { %vm2444_vm10 = vcmp.ge.f32.partialorder %v2441_v51, 0.0  ;;  %v2445_v36 = vmul.f32 0.01, %v2441_v51 }
 0xa57   : > { %v2446_v53 = vsel %vm2444_vm10, %v2441_v51, %v2445_v36 }
 0xa58   : > { %3566 = vmatmul.mubr.msk.f32.gmra.mrb[34].mxu0 %vm2453_vm2, %v2446_v53  ;;  %3583 = vmatmul.mubr.msk.f32.gmra.mrb[38].mxu1 %vm2453_vm2, %v2446_v53 }
 0xa59   : > { %3593 = vmatprep.mubr.msk.f32.mxu0 %vm2453_vm2, %v2287_v24 }
 0xa5c   : > { %3594 = vmatmul.mubr.msk.f32.vlgmr.msra.gmra.mrb[36].mxu0 %vm2453_vm2, %v2288_v31 }
 0xa5d   : > { %3596 = vmatprep.mubr.msk.f32.mxu0 %vm2453_vm2, %v2289_v26 }
 0xa60   : > { %3597 = vmatmul.mubr.msk.f32.gmra.mrb[38].mxu0 %vm2453_vm2, %v2290_v45 }
 0xa61   : > { %3599 = vmatprep.mubr.msk.f32.mxu0 %vm2453_vm2, %v2291_v52 }
 0xa64   : > { %3600 = vmatmul.mubr.msk.f32.gmra.mrb[40].mxu0 %vm2453_vm2, %v2446_v53 }
 0xb1b   : > { %v3561_v55 = vpop.f32.mrb[30].mxu0  ;;  %v3578_v56 = vpop.f32.mrb[34].mxu1 }
 0xb1c   : > { %v2645_v40 = vadd.f32 %v3578_v56, %v3251_v13  ;;  %v2538_v58 = vpop.f32.mrb[31].mxu0  ;;  %v2639_v29 = vpop.f32.mrb[35].mxu1  ;;  %v2544_v22 = vadd.f32 %v3561_v55, %v3244_v54 }
 0xb1d   : > { %v2539_v41 = vadd.f32 %v3244_v54, %v2538_v58  ;;  %v2640_v5 = vadd.f32 %v3251_v13, %v2639_v29 }
 0xb1f   : > { %v3698_v60 = vpack.c.bf16 %v2645_v40, %v2640_v5  ;;  %3614 = vmatprep.mubr.msk.f32.mxu1 %vm2453_vm2, %v2539_v41 }
 0xb21   : > { %3700 = vmatprep.subr.msk.bf16.mxu1 %vm4609_vm8, %v3698_v60 }
 0xb22   : > { %3703 = vmatpush3.bf16.xpose.msk.msra.mxu1 %vm4609_vm8, %v3698_v60 }
 0xb23   : > { %v3564_v61 = vpop.f32.mrb[32].mxu0  ;;  %v3581_v62 = vpop.f32.mrb[36].mxu1 }
 0xb24   : > { %v2655_v63 = vadd.f32 %v3581_v62, %v3251_v13  ;;  %v2548_v0 = vpop.f32.mrb[33].mxu0  ;;  %v2649_v1 = vpop.f32.mrb[37].mxu1  ;;  %v2554_v37 = vadd.f32 %v3564_v61, %v3244_v54 }
 0xb25   : > { %v2650_v38 = vadd.f32 %v3251_v13, %v2649_v1  ;;  %v2549_v25 = vadd.f32 %v3244_v54, %v2548_v0 }
 0xb27   : > { %v3704_v2 = vpack.c.bf16 %v2655_v63, %v2650_v38 }
 0xb29   : > { %3706 = vmatprep.subr.msk.bf16.mxu1 %vm4609_vm8, %v3704_v2 }
 0xb2a   : > { %3709 = vmatpush3.bf16.xpose.msk.msra.mxu1 %vm4609_vm8, %v3704_v2 }
 0xb2b   : > { %v3567_v9 = vpop.f32.mrb[34].mxu0  ;;  %v3584_v3 = vpop.f32.mrb[38].mxu1 }
 0xb2c   : > { %v2665_v57 = vadd.f32 %v3584_v3, %v3251_v13  ;;  %v2558_v6 = vpop.f32.mrb[35].mxu0  ;;  %v2659_v7 = vpop.f32.mrb[39].mxu1  ;;  %v2564_v33 = vadd.f32 %v3567_v9, %v3244_v54 }
 0xb2d   : > { %v2660_v8 = vadd.f32 %v3251_v13, %v2659_v7  ;;  %v2559_v32 = vadd.f32 %v3244_v54, %v2558_v6 }
 0xb2f   : > { %v3710_v12 = vpack.c.bf16 %v2665_v57, %v2660_v8  ;;  %v3595_v14 = vpop.f32.mrb[36].mxu0 }
 0xb30   : > { %v2746_v15 = vadd.f32 %v3595_v14, %v3258_v11  ;;  %v2740_v16 = vpop.f32.mrb[37].mxu0 }
 0xb31   : > { %v2741_v17 = vadd.f32 %v3258_v11, %v2740_v16  ;;  %3712 = vmatprep.subr.msk.bf16.mxu1 %vm4609_vm8, %v3710_v12 }
 0xb32   : > { %3715 = vmatpush3.bf16.xpose.msk.msra.mxu1 %vm4609_vm8, %v3710_v12 }
 0xb33   : > { %v3716_v18 = vpack.c.bf16 %v2746_v15, %v2741_v17  ;;  %v3598_v19 = vpop.f32.mrb[38].mxu0 }
 0xb34   : > { %v2756_v50 = vadd.f32 %v3598_v19, %v3258_v11  ;;  %v2750_v20 = vpop.f32.mrb[39].mxu0 }
 0xb35   : > { %v2751_v21 = vadd.f32 %v3258_v11, %v2750_v20  ;;  %3717 = vmatprep.subr.bf16.mxu0 %v3716_v18 }
 0xb36   : > { %3719 = vmatpush3.bf16.msra.mxu0 %v3716_v18 }
 0xb37   : > { %v3720_v23 = vpack.c.bf16 %v2756_v50, %v2751_v21  ;;  %v3601_v24 = vpop.f32.mrb[40].mxu0 }
 0xb38   : > { %v2766_v27 = vadd.f32 %v3601_v24, %v3258_v11  ;;  %v2760_v28 = vpop.f32.mrb[41].mxu0 }
 0xb39   : > { %v2761_v4 = vadd.f32 %v3258_v11, %v2760_v28  ;;  %3615 = vmatmul.mubr.msk.f32.vlgmr.msra.gmra.mrb[40].mxu1 %vm2453_vm2, %v2544_v22  ;;  %3721 = vmatprep.subr.bf16.mxu0 %v3720_v23 }
 0xb3a   : > { %3617 = vmatprep.mubr.msk.f32.mxu1 %vm2453_vm2, %v2549_v25  ;;  %3723 = vmatpush3.bf16.msra.mxu0 %v3720_v23 }
 0xb3b   : > { %v3724_v31 = vpack.c.bf16 %v2766_v27, %v2761_v4 }
 0xb3d   : > { %3618 = vmatmul.mubr.msk.f32.gmra.mrb[42].mxu1 %vm2453_vm2, %v2554_v37  ;;  %3725 = vmatprep.subr.bf16.mxu0 %v3724_v31 }
 0xb3e   : > { %3620 = vmatprep.mubr.msk.f32.mxu1 %vm2453_vm2, %v2559_v32  ;;  %3727 = vmatpush3.bf16.msra.mxu0 %v3724_v31 }
 0xb41   : > { %3621 = vmatmul.mubr.msk.f32.gmra.mrb[44].mxu1 %vm2453_vm2, %v2564_v33 }
 0xc0c   : > { %v3616_v34 = vpop.f32.mrb[40].mxu1 }
 0xc0d   : > { %v2901_v35 = vmul.f32 0.17677669, %v3616_v34  ;;  %v2871_v10 = vpop.f32.mrb[41].mxu1 }
 0xc0e   : > { %v2900_v39 = vmul.f32 0.17677669, %v2871_v10  ;;  %v1443_v10 = vld [vmem:[%s4706_s23 + $0x8] sm:$0xff] }
 0xc0f   : > { %v2910_v26 = vsel %vm2906_vm1, %v2901_v35, -inf }
 0xc10   : > { %2911 = vmax.xlane.f32.xlu0 %v2910_v26  ;;  %v3619_v42 = vpop.f32.mrb[42].mxu1  ;;  %v2907_v46 = vsel %vm2906_vm1, %v2900_v39, -inf }
 0xc11   : > { %v2903_v43 = vmul.f32 0.17677669, %v3619_v42  ;;  %v2881_v44 = vpop.f32.mrb[43].mxu1 }
 0xc12   : > { %v2902_v45 = vmul.f32 0.17677669, %v2881_v44 }
 0xc13   : > { %v2916_v47 = vsel %vm2906_vm1, %v2903_v43, -inf }
 0xc14   : > { %2908 = vmax.xlane.f32.xlu0 %v2907_v46  ;;  %2917 = vmax.xlane.f32.xlu1 %v2916_v47  ;;  %v3622_v48 = vpop.f32.mrb[44].mxu1  ;;  %v2913_v52 = vsel %vm2906_vm1, %v2902_v45, -inf  ;;  %v1445_v46 = vld [vmem:[%s4706_s23 + $0x18] sm:$0xff]  ;;  %v1444_v47 = vld [vmem:[%s4706_s23 + $0x10] sm:$0xff] }
 0xc15   : > { %v2905_v49 = vmul.f32 0.17677669, %v3622_v48  ;;  %v2891_v51 = vpop.f32.mrb[45].mxu1 }
 0xc16   : > { %v2904_v30 = vmul.f32 0.17677669, %v2891_v51 }
 0xc17   : > { %v2922_v36 = vsel %vm2906_vm1, %v2905_v49, -inf }
 0xc18   : > { %2914 = vmax.xlane.f32.xlu0 %v2913_v52  ;;  %2923 = vmax.xlane.f32.xlu1 %v2922_v36  ;;  %v2919_v53 = vsel %vm2906_vm1, %v2904_v30, -inf }
 0xc1c   : > { %2920 = vmax.xlane.f32.xlu0 %v2919_v53  ;;  %v1447_v53 = vld [vmem:[%s4706_s23 + $0x28] sm:$0xff] }
 0xc9d   : > { %v2912_v13 = vpop.xlane.xlu0 %2911 }
 0xc9e   : > { %v2926_v54 = vsub.f32 %v2901_v35, %v2912_v13  ;;  %v1446_v13 = vld [vmem:[%s4706_s23 + $0x20] sm:$0xff] }
 0xca0   : > { %v2933_v55 = vmul.f32 1.442695, %v2926_v54 }
 0xca1   : > { %v2909_v56 = vpop.xlane.xlu0 %2908  ;;  %v2918_v40 = vpop.xlane.xlu1 %2917 }
 0xca2   : > { %3796 = vpow2.f32 %v2933_v55  ;;  %v2925_v58 = vsub.f32 %v2900_v39, %v2909_v56  ;;  %v2928_v29 = vsub.f32 %v2903_v43, %v2918_v40  ;;  %v1442_v39 = vld [vmem:[%s4706_s23] sm:$0xff] }
 0xca4   : > { %v2931_v41 = vmul.f32 1.442695, %v2925_v58  ;;  %v2937_v5 = vmul.f32 1.442695, %v2928_v29 }
 0xca5   : > { %v2915_v59 = vpop.xlane.xlu0 %2914  ;;  %v2924_v60 = vpop.xlane.xlu1 %2923 }
 0xca6   : > { %3798 = vpow2.f32 %v2931_v41  ;;  %v2927_v61 = vsub.f32 %v2902_v45, %v2915_v59  ;;  %v2930_v62 = vsub.f32 %v2905_v49, %v2924_v60 }
 0xca7   : > { %3800 = vpow2.f32 %v2937_v5 }
 0xca8   : > { %v2935_v63 = vmul.f32 1.442695, %v2927_v61  ;;  %v2941_v0 = vmul.f32 1.442695, %v2930_v62 }
 0xca9   : > { %v2921_v1 = vpop.xlane.xlu0 %2920 }
 0xcaa   : > { %3802 = vpow2.f32 %v2935_v63  ;;  %v2929_v38 = vsub.f32 %v2904_v30, %v2921_v1 }
 0xcab   : > { %3804 = vpow2.f32 %v2941_v0 }
 0xcac   : > { %v3797_v2 = vpop.eup %3796  ;;  %v2939_v9 = vmul.f32 1.442695, %v2929_v38 }
 0xcad   : > { %v2946_v3 = vsel %vm2906_vm1, %v3797_v2, 0.0 }
 0xcae   : > { %3806 = vpow2.f32 %v2939_v9  ;;  %2947 = vadd.xlane.f32.xlu1 %v2946_v3 }
 0xcb0   : > { %v3799_v57 = vpop.eup %3798 }
 0xcb1   : > { %v3801_v6 = vpop.eup %3800  ;;  %v2943_v7 = vsel %vm2906_vm1, %v3799_v57, 0.0 }
 0xcb2   : > { %v2952_v8 = vsel %vm2906_vm1, %v3801_v6, 0.0  ;;  %2944 = vadd.xlane.f32.xlu0 %v2943_v7 }
 0xcb3   : > { %2953 = vadd.xlane.f32.xlu1 %v2952_v8 }
 0xcb4   : > { %v3803_v11 = vpop.eup %3802 }
 0xcb5   : > { %v3805_v12 = vpop.eup %3804  ;;  %v2949_v14 = vsel %vm2906_vm1, %v3803_v11, 0.0 }
 0xcb6   : > { %v2958_v15 = vsel %vm2906_vm1, %v3805_v12, 0.0  ;;  %2950 = vadd.xlane.f32.xlu0 %v2949_v14 }
 0xcb7   : > { %2959 = vadd.xlane.f32.xlu1 %v2958_v15 }
 0xcb8   : > { %v3807_v16 = vpop.eup %3806 }
 0xcb9   : > { %v2955_v17 = vsel %vm2906_vm1, %v3807_v16, 0.0 }
 0xcba   : > { %2956 = vadd.xlane.f32.xlu0 %v2955_v17 }
 0xd3b   : > { %v2948_v18 = vpop.xlane.xlu1 %2947 }
 0xd3c   : > { %3808 = vrcp.f32 %v2948_v18 }
 0xd3f   : > { %v2945_v19 = vpop.xlane.xlu0 %2944 }
 0xd40   : > { %v2954_v50 = vpop.xlane.xlu1 %2953  ;;  %3810 = vrcp.f32 %v2945_v19 }
 0xd41   : > { %3812 = vrcp.f32 %v2954_v50 }
 0xd43   : > { %v2951_v20 = vpop.xlane.xlu0 %2950 }
 0xd44   : > { %v2960_v21 = vpop.xlane.xlu1 %2959  ;;  %3814 = vrcp.f32 %v2951_v20 }
 0xd45   : > { %3816 = vrcp.f32 %v2960_v21 }
 0xd46   : > { %v3809_v23 = vpop.eup %3808 }
 0xd47   : > { %v2957_v22 = vpop.xlane.xlu0 %2956  ;;  %v2968_v27 = vmul.f32 %v3809_v23, %v3797_v2 }
 0xd48   : > { %3818 = vrcp.f32 %v2957_v22 }
 0xd4a   : > { %v3811_v24 = vpop.eup %3810 }
 0xd4b   : > { %v2967_v25 = vmul.f32 %v3811_v24, %v3799_v57  ;;  %v3813_v28 = vpop.eup %3812  ;;  %v1448_v57 = vld [vmem:[#allocation2] sm:$0x1] }
 0xd4c   : > { %v2970_v31 = vmul.f32 %v3813_v28, %v3801_v6 }
 0xd4d   : > { %3635 = vmatprep.mubr.msk.f32.mxu0 %vm2906_vm1, %v2967_v25 }
 0xd4e   : > { %v3815_v4 = vpop.eup %3814  ;;  %3636 = vmatmul.mubr.msk.f32.vlgmr.msra.gmra.mrb[42].mxu0 %vm2906_vm1, %v2968_v27 }
 0xd4f   : > { %v2969_v37 = vmul.f32 %v3815_v4, %v3803_v11  ;;  %v3817_v32 = vpop.eup %3816 }
 0xd50   : > { %v2972_v35 = vmul.f32 %v3817_v32, %v3805_v12 }
 0xd51   : > { %3638 = vmatprep.mubr.msk.f32.mxu0 %vm2906_vm1, %v2969_v37 }
 0xd52   : > { %v3819_v33 = vpop.eup %3818  ;;  %3639 = vmatmul.mubr.msk.f32.gmra.mrb[44].mxu0 %vm2906_vm1, %v2970_v31 }
 0xd53   : > { %v2971_v34 = vmul.f32 %v3819_v33, %v3807_v16 }
 0xd55   : > { %3641 = vmatprep.mubr.msk.f32.mxu0 %vm2906_vm1, %v2971_v34 }
 0xd56   : > { %3642 = vmatmul.mubr.msk.f32.gmra.mrb[46].mxu0 %vm2906_vm1, %v2972_v35 }
 0xe21   : > { %v3637_v26 = vpop.f32.mrb[42].mxu0 }
 0xe22   : > { %v3087_v42 = vmul.f32 %v3637_v26, %v1443_v10  ;;  %v3057_v43 = vpop.f32.mrb[43].mxu0 }
 0xe23   : > { %v3086_v44 = vmul.f32 %v3057_v43, %v1442_v39 }
 0xe24   : > { %v3093_v45 = vsel %vm2453_vm2, %v3087_v42, 0.0 }
 0xe25   : > { %v3092_v48 = vsel %vm2453_vm2, %v3086_v44, 0.0  ;;  %v3640_v49 = vpop.f32.mrb[44].mxu0 }
 0xe26   : > { %v3094_v51 = vadd.f32 %v3093_v45, %v3092_v48  ;;  %v3067_v30 = vpop.f32.mrb[45].mxu0  ;;  %v3089_v52 = vmul.f32 %v3640_v49, %v1445_v46 }
 0xe27   : > { %v3088_v36 = vmul.f32 %v3067_v30, %v1444_v47 }
 0xe28   : > { %v3097_v58 = vsel %vm2453_vm2, %v3089_v52, 0.0 }
 0xe29   : > { %v3095_v54 = vsel %vm2453_vm2, %v3088_v36, 0.0  ;;  %v3643_v55 = vpop.f32.mrb[46].mxu0 }
 0xe2a   : > { %v3096_v56 = vadd.f32 %v3095_v54, %v3094_v51  ;;  %v3077_v40 = vpop.f32.mrb[47].mxu0  ;;  %v3091_v29 = vmul.f32 %v3643_v55, %v1447_v53 }
 0xe2b   : > { %v3090_v41 = vmul.f32 %v3077_v40, %v1446_v13 }
 0xe2c   : > { %v3098_v5 = vadd.f32 %v3097_v58, %v3096_v56  ;;  %v3101_v61 = vsel %vm2453_vm2, %v3091_v29, 0.0 }
 0xe2d   : > { %v3099_v59 = vsel %vm2453_vm2, %v3090_v41, 0.0 }
 0xe2e   : > { %v3100_v60 = vadd.f32 %v3099_v59, %v3098_v5 }
 0xe30   : > { %v3102_v62 = vadd.f32 %v3101_v61, %v3100_v60 }
 0xe32   : > { %3103 = vadd.xlane.f32.xlu0 %v3102_v62 }
 0xebf   : > { %v3104_v63 = vpop.xlane.xlu0 %3103 }
 0xec0   : > { %v3105_v0 = vrot.slane %v3104_v63, 4 }
 0xec2   : > { %v3106_v1 = vadd.f32 %v3105_v0, %v3104_v63 }
 0xec4   : > { %v3107_v38 = vrot.slane %v3106_v1, 2 }
 0xec6   : > { %v3108_v2 = vadd.f32 %v3107_v38, %v3106_v1 }
 0xec8   : > { %v3109_v9 = vrot.slane %v3108_v2, 1 }
 0xeca   : > { %v3110_v3 = vadd.f32 %v3109_v9, %v3108_v2 }
 0xecc   : > { %3732 = vpush %v3110_v3 }
 0xefd   : > { %s3733_s1 = spop %3732 }
 0xefe   : > { %v3112_v6 = vstv %s3733_s1 }
 0xeff   : > { %v3113_v7 = vadd.f32 %v3112_v6, %v1448_v57 }
 0xf01   : > { %3115 = vst.msk [vmem:[%s776_s28] sm:$0x1] %vm3114_vm9, %v3113_v7 }
 0xf02 PF: > { %s37_s6 = sadd.s32 1, %s3826_s6  }
 0xf03   : > { %p34_p4 = scmp.ge.s32.totalorder %s37_s6, 4  }
 0xf05   :  { %36 = sbr.rel (!%p34_p4) target bundleno = 11 (0xb), region = 153 }

</bundles_post_ra>
